<compile_context>
chip_gen: v7x
topology: tpu7x:2x2x1
jax: 0.10.0
libtpu: 0.0.40
codegen_flags: <defaults>
</compile_context>

<pallas_src>
import functools

import jax
import jax.numpy as jnp
from jax import lax
from jax.experimental import pallas as pl
from jax.experimental.pallas import tpu as pltpu

EPS = 1e-5  # nn.BatchNorm2d default eps


def residual_block_kernel(x_ref, wb1_ref, wb2_ref,
                          g1_ref, b1_ref, g2_ref, b2_ref, o_ref):
    # x_ref  : (N, H, W*C)    lane-dense activations (f32)       (VMEM)
    # wb*_ref: (3, W*C, W*C)  block-banded conv weights per dy   (VMEM)
    # g*/b*  : (1, C)         BN gamma / beta                    (VMEM)
    # o_ref  : (N, H, W*C)    lane-dense output                  (VMEM)
    N, H, WC = x_ref.shape
    C = g1_ref.shape[-1]
    W = WC // C
    inv_cnt = 1.0 / float(N * H * W)
    mxu_dtype = wb1_ref.dtype

    def conv3x3(v2, wb_ref):
        # v2: (N*H, W*C) f32.  One dense K=W*C MXU matmul per dy tap; the
        # W-direction taps / channel mixing live inside the block-banded
        # weight (zero-padding along W implicit), the H taps are sublane
        # shifts with an explicit zero boundary row per image.
        v3 = v2.reshape(N, H, WC).astype(mxu_dtype)
        zrow = jnp.zeros((N, 1, WC), mxu_dtype)
        up = jnp.concatenate([zrow, v3[:, :H - 1, :]], axis=1)   # row h-1 (dy=0)
        dn = jnp.concatenate([v3[:, 1:, :], zrow], axis=1)       # row h+1 (dy=2)
        acc = jnp.dot(up.reshape(N * H, WC), wb_ref[0],
                      preferred_element_type=jnp.float32)
        acc = acc + jnp.dot(v3.reshape(N * H, WC), wb_ref[1],
                            preferred_element_type=jnp.float32)
        acc = acc + jnp.dot(dn.reshape(N * H, WC), wb_ref[2],
                            preferred_element_type=jnp.float32)
        return acc                                               # (N*H, W*C) f32

    def lane_to_channel(v):
        # (1, W*C) -> (1, C): fold the W lane-blocks of each channel.
        acc = v[:, :C]
        for w in range(1, W):
            acc = acc + v[:, w * C:(w + 1) * C]
        return acc

    def channel_to_lane(v):
        # (1, C) -> (1, W*C): repeat per lane-block.
        return jnp.concatenate([v] * W, axis=-1)

    def batchnorm(v, g_ref, b_ref):
        # Training-mode BN, single pass: sum & sum-of-squares, biased variance,
        # affine folded into one lane-dense scale/shift FMA.
        s = jnp.sum(v, axis=0, keepdims=True)                    # (1, W*C)
        ss = jnp.sum(v * v, axis=0, keepdims=True)               # (1, W*C)
        mean = lane_to_channel(s) * inv_cnt                      # (1, C)
        var = lane_to_channel(ss) * inv_cnt - mean * mean        # (1, C)
        scale = g_ref[...] * lax.rsqrt(var + EPS)                # (1, C)
        shift = b_ref[...] - mean * scale                        # (1, C)
        return v * channel_to_lane(scale) + channel_to_lane(shift)

    x2 = x_ref[...].reshape(N * H, WC).astype(jnp.float32)

    # conv1 -> BN1 -> ReLU, all in registers (no VMEM scratch round-trip)
    h = jnp.maximum(batchnorm(conv3x3(x2, wb1_ref), g1_ref, b1_ref), 0.0)
    # conv2 -> BN2 -> residual add
    y = batchnorm(conv3x3(h, wb2_ref), g2_ref, b2_ref)

    o_ref[...] = (x2 + y).reshape(N, H, WC).astype(o_ref.dtype)


def _band_weights(w_oihw, W):
    """OIHW (C,C,3,3) -> (3, W*C, W*C) block-banded weights (one band per dy).

    band[dy][w_in*C + ci, w_out*C + co] = w[co, ci, dy, w_in - w_out + 1]
    (zero outside the +/-1 block band), so
      out[:, w_out*C:(w_out+1)*C] = sum_dy shift_dy(x) @ band[dy]
    is the 3x3 'same' conv with zero padding along W built into the band.
    """
    bands = []
    for dy in range(3):
        m = None
        for dx in range(3):
            term = jnp.kron(jnp.eye(W, k=1 - dx, dtype=jnp.float32),
                            w_oihw[:, :, dy, dx].T)
            m = term if m is None else m + term
        bands.append(m)
    return jnp.stack(bands)


@functools.partial(jax.jit, static_argnames=("mxu_dtype",))
def residual_block(x_nchw, w1_oihw, w2_oihw, g1, b1, g2, b2,
                   *, mxu_dtype=jnp.bfloat16):
    N, C, H, W = x_nchw.shape
    WC = W * C

    # NCHW -> lane-dense (N, H, W*C); pure layout plumbing in the wrapper.
    x_dense = jnp.transpose(x_nchw, (0, 2, 3, 1)).reshape(N, H, WC)

    wb1 = _band_weights(w1_oihw, W).astype(mxu_dtype)
    wb2 = _band_weights(w2_oihw, W).astype(mxu_dtype)

    def full(shape):
        nd = len(shape)
        return pl.BlockSpec(shape, lambda i: (0,) * nd)

    out_dense = pl.pallas_call(
        residual_block_kernel,
        out_shape=jax.ShapeDtypeStruct((N, H, WC), x_nchw.dtype),
        grid=(1,),
        in_specs=[
            full((N, H, WC)),        # x, lane-dense
            full((3, WC, WC)),       # conv1 band weights
            full((3, WC, WC)),       # conv2 band weights
            full((1, C)),            # gamma1
            full((1, C)),            # beta1
            full((1, C)),            # gamma2
            full((1, C)),            # beta2
        ],
        out_specs=full((N, H, WC)),
        compiler_params=pltpu.CompilerParams(
            dimension_semantics=("arbitrary",)),
    )(x_dense, wb1, wb2,
      g1.reshape(1, C), b1.reshape(1, C), g2.reshape(1, C), b2.reshape(1, C))

    # lane-dense -> NCHW
    return jnp.transpose(out_dense.reshape(N, H, W, C), (0, 3, 1, 2))


def reference_nchw(x, w1_oihw, w2_oihw, g1, b1, g2, b2):
    """Pure-JAX reference mirroring the PyTorch forward (training-mode BN)."""
    def conv(v, w):
        return lax.conv_general_dilated(
            v, w, window_strides=(1, 1), padding=((1, 1), (1, 1)),
            dimension_numbers=('NCHW', 'OIHW', 'NCHW'),
            precision=lax.Precision.HIGHEST)

    def bn(v, g, b):
        m = jnp.mean(v, axis=(0, 2, 3), keepdims=True)
        var = jnp.mean((v - m) ** 2, axis=(0, 2, 3), keepdims=True)
        return ((v - m) * lax.rsqrt(var + EPS) * g.reshape(1, -1, 1, 1)
                + b.reshape(1, -1, 1, 1))

    h = jnp.maximum(bn(conv(x, w1_oihw), g1, b1), 0.0)
    return x + bn(conv(h, w2_oihw), g2, b2)


if __name__ == "__main__":
    N, C, H, W = 2, 8, 16, 16   # W*C = 128 -> fully lane-dense activations

    key = jax.random.PRNGKey(0)
    kx, kw1, kw2, kg1, kb1, kg2, kb2 = jax.random.split(key, 7)

    x = jax.random.normal(kx, (N, C, H, W), jnp.float32)            # NCHW input
    w1 = 0.1 * jax.random.normal(kw1, (C, C, 3, 3), jnp.float32)    # OIHW
    w2 = 0.1 * jax.random.normal(kw2, (C, C, 3, 3), jnp.float32)    # OIHW
    g1 = 1.0 + 0.1 * jax.random.normal(kg1, (C,), jnp.float32)
    b1 = 0.1 * jax.random.normal(kb1, (C,), jnp.float32)
    g2 = 1.0 + 0.1 * jax.random.normal(kg2, (C,), jnp.float32)
    b2 = 0.1 * jax.random.normal(kb2, (C,), jnp.float32)

    ref = reference_nchw(x, w1, w2, g1, b1, g2, b2)

    # f32 MXU-operand path: tight check against the PyTorch-equivalent reference.
    out_f32 = residual_block(x, w1, w2, g1, b1, g2, b2, mxu_dtype=jnp.float32)
    jax.block_until_ready(out_f32)
    err_f32 = float(jnp.max(jnp.abs(out_f32 - ref)))
    assert jnp.allclose(out_f32, ref, rtol=2e-4, atol=2e-4), \
        f"f32 path max abs err {err_f32}"

    # bf16 MXU-operand path (recommended on v6e/v7x): f32 accumulation and f32
    # BN math; tolerance sized for bf16 operand quantization.
    out_bf16 = residual_block(x, w1, w2, g1, b1, g2, b2, mxu_dtype=jnp.bfloat16)
    jax.block_until_ready(out_bf16)
    err_bf16 = float(jnp.max(jnp.abs(out_bf16 - ref)))
    assert jnp.allclose(out_bf16, ref, rtol=5e-2, atol=5e-2), \
        f"bf16 path max abs err {err_bf16}"

    print("KERNEL_OK")
</pallas_src>

<mosaic_0001>
module attributes {stable_mosaic.version = 11 : i64} {
  func.func @residual_block_kernel(%arg0: i32, %arg1: memref<2x16x128xf32, #tpu.memory_space<vmem>>, %arg2: memref<3x128x128xf32, #tpu.memory_space<vmem>>, %arg3: memref<3x128x128xf32, #tpu.memory_space<vmem>>, %arg4: memref<1x8xf32, #tpu.memory_space<vmem>>, %arg5: memref<1x8xf32, #tpu.memory_space<vmem>>, %arg6: memref<1x8xf32, #tpu.memory_space<vmem>>, %arg7: memref<1x8xf32, #tpu.memory_space<vmem>>, %arg8: memref<2x16x128xf32, #tpu.memory_space<vmem>>) attributes {dimension_semantics = [#tpu.dimension_semantics<arbitrary>], iteration_bounds = array<i64: 1>, scalar_prefetch = 0 : i64, scratch_operands = 0 : i64, tpu.core_type = #tpu.core_type<tc>, window_params = [{pipeline_mode = #tpu.pipeline_mode<synchronous>, transform_indices = @transform_0, window_bounds = array<i64: 2, 16, 128>}, {pipeline_mode = #tpu.pipeline_mode<synchronous>, transform_indices = @transform_1, window_bounds = array<i64: 3, 128, 128>}, {pipeline_mode = #tpu.pipeline_mode<synchronous>, transform_indices = @transform_2, window_bounds = array<i64: 3, 128, 128>}, {pipeline_mode = #tpu.pipeline_mode<synchronous>, transform_indices = @transform_3, window_bounds = array<i64: 1, 8>}, {pipeline_mode = #tpu.pipeline_mode<synchronous>, transform_indices = @transform_4, window_bounds = array<i64: 1, 8>}, {pipeline_mode = #tpu.pipeline_mode<synchronous>, transform_indices = @transform_5, window_bounds = array<i64: 1, 8>}, {pipeline_mode = #tpu.pipeline_mode<synchronous>, transform_indices = @transform_6, window_bounds = array<i64: 1, 8>}, {pipeline_mode = #tpu.pipeline_mode<synchronous>, transform_indices = @transform_7, window_bounds = array<i64: 2, 16, 128>}]} {
    %c0 = arith.constant 0 : index
    %c0_0 = arith.constant 0 : index
    %c0_1 = arith.constant 0 : index
    %0 = vector.load %arg1[%c0, %c0_0, %c0_1] : memref<2x16x128xf32, #tpu.memory_space<vmem>>, vector<2x16x128xf32>
    %1 = vector.shape_cast %0 : vector<2x16x128xf32> to vector<32x128xf32>
    %2 = vector.shape_cast %1 : vector<32x128xf32> to vector<2x16x128xf32>
    %cst = arith.constant 0.000000e+00 : f32
    %3 = vector.broadcast %cst : f32 to vector<2x1x128xf32>
    %4 = vector.extract_strided_slice %2 {offsets = [0, 0, 0], sizes = [2, 15, 128], strides = [1, 1, 1]} : vector<2x16x128xf32> to vector<2x15x128xf32>
    %5 = tpu.concatenate %3, %4 in 1 : vector<2x1x128xf32>, vector<2x15x128xf32> -> vector<2x16x128xf32>
    %6 = vector.extract_strided_slice %2 {offsets = [0, 1, 0], sizes = [2, 15, 128], strides = [1, 1, 1]} : vector<2x16x128xf32> to vector<2x15x128xf32>
    %7 = tpu.concatenate %6, %3 in 1 : vector<2x15x128xf32>, vector<2x1x128xf32> -> vector<2x16x128xf32>
    %8 = vector.shape_cast %5 : vector<2x16x128xf32> to vector<32x128xf32>
    %c0_2 = arith.constant 0 : index
    %c0_3 = arith.constant 0 : index
    %c0_4 = arith.constant 0 : index
    %9 = vector.load %arg2[%c0_2, %c0_3, %c0_4] : memref<3x128x128xf32, #tpu.memory_space<vmem>>, vector<1x128x128xf32>
    %10 = vector.shape_cast %9 : vector<1x128x128xf32> to vector<128x128xf32>
    %cst_5 = arith.constant dense<0.000000e+00> : vector<32x128xf32>
    %11 = tpu.matmul %8, %10, %cst_5 {dimension_numbers = #tpu.dot_dimension_numbers<[1], [0], [0], [1], [0, 0, 1, 1], [], []>} : vector<32x128xf32>, vector<128x128xf32>, vector<32x128xf32> -> vector<32x128xf32>
    %12 = vector.shape_cast %2 : vector<2x16x128xf32> to vector<32x128xf32>
    %c1 = arith.constant 1 : index
    %c0_6 = arith.constant 0 : index
    %c0_7 = arith.constant 0 : index
    %13 = vector.load %arg2[%c1, %c0_6, %c0_7] : memref<3x128x128xf32, #tpu.memory_space<vmem>>, vector<1x128x128xf32>
    %14 = vector.shape_cast %13 : vector<1x128x128xf32> to vector<128x128xf32>
    %cst_8 = arith.constant dense<0.000000e+00> : vector<32x128xf32>
    %15 = tpu.matmul %12, %14, %cst_8 {dimension_numbers = #tpu.dot_dimension_numbers<[1], [0], [0], [1], [0, 0, 1, 1], [], []>} : vector<32x128xf32>, vector<128x128xf32>, vector<32x128xf32> -> vector<32x128xf32>
    %16 = arith.addf %11, %15 : vector<32x128xf32>
    %17 = vector.shape_cast %7 : vector<2x16x128xf32> to vector<32x128xf32>
    %c2 = arith.constant 2 : index
    %c0_9 = arith.constant 0 : index
    %c0_10 = arith.constant 0 : index
    %18 = vector.load %arg2[%c2, %c0_9, %c0_10] : memref<3x128x128xf32, #tpu.memory_space<vmem>>, vector<1x128x128xf32>
    %19 = vector.shape_cast %18 : vector<1x128x128xf32> to vector<128x128xf32>
    %cst_11 = arith.constant dense<0.000000e+00> : vector<32x128xf32>
    %20 = tpu.matmul %17, %19, %cst_11 {dimension_numbers = #tpu.dot_dimension_numbers<[1], [0], [0], [1], [0, 0, 1, 1], [], []>} : vector<32x128xf32>, vector<128x128xf32>, vector<32x128xf32> -> vector<32x128xf32>
    %21 = arith.addf %16, %20 : vector<32x128xf32>
    %cst_12 = arith.constant dense<0.000000e+00> : vector<128xf32>
    %22 = vector.multi_reduction <add>, %21, %cst_12 [0] : vector<32x128xf32> to vector<128xf32>
    %23 = vector.shape_cast %22 : vector<128xf32> to vector<1x128xf32>
    %24 = arith.mulf %21, %21 : vector<32x128xf32>
    %cst_13 = arith.constant dense<0.000000e+00> : vector<128xf32>
    %25 = vector.multi_reduction <add>, %24, %cst_13 [0] : vector<32x128xf32> to vector<128xf32>
    %26 = vector.shape_cast %25 : vector<128xf32> to vector<1x128xf32>
    %27 = vector.extract_strided_slice %23 {offsets = [0, 0], sizes = [1, 8], strides = [1, 1]} : vector<1x128xf32> to vector<1x8xf32>
    %28 = vector.extract_strided_slice %23 {offsets = [0, 8], sizes = [1, 8], strides = [1, 1]} : vector<1x128xf32> to vector<1x8xf32>
    %29 = arith.addf %27, %28 : vector<1x8xf32>
    %30 = vector.extract_strided_slice %23 {offsets = [0, 16], sizes = [1, 8], strides = [1, 1]} : vector<1x128xf32> to vector<1x8xf32>
    %31 = arith.addf %29, %30 : vector<1x8xf32>
    %32 = vector.extract_strided_slice %23 {offsets = [0, 24], sizes = [1, 8], strides = [1, 1]} : vector<1x128xf32> to vector<1x8xf32>
    %33 = arith.addf %31, %32 : vector<1x8xf32>
    %34 = vector.extract_strided_slice %23 {offsets = [0, 32], sizes = [1, 8], strides = [1, 1]} : vector<1x128xf32> to vector<1x8xf32>
    %35 = arith.addf %33, %34 : vector<1x8xf32>
    %36 = vector.extract_strided_slice %23 {offsets = [0, 40], sizes = [1, 8], strides = [1, 1]} : vector<1x128xf32> to vector<1x8xf32>
    %37 = arith.addf %35, %36 : vector<1x8xf32>
    %38 = vector.extract_strided_slice %23 {offsets = [0, 48], sizes = [1, 8], strides = [1, 1]} : vector<1x128xf32> to vector<1x8xf32>
    %39 = arith.addf %37, %38 : vector<1x8xf32>
    %40 = vector.extract_strided_slice %23 {offsets = [0, 56], sizes = [1, 8], strides = [1, 1]} : vector<1x128xf32> to vector<1x8xf32>
    %41 = arith.addf %39, %40 : vector<1x8xf32>
    %42 = vector.extract_strided_slice %23 {offsets = [0, 64], sizes = [1, 8], strides = [1, 1]} : vector<1x128xf32> to vector<1x8xf32>
    %43 = arith.addf %41, %42 : vector<1x8xf32>
    %44 = vector.extract_strided_slice %23 {offsets = [0, 72], sizes = [1, 8], strides = [1, 1]} : vector<1x128xf32> to vector<1x8xf32>
    %45 = arith.addf %43, %44 : vector<1x8xf32>
    %46 = vector.extract_strided_slice %23 {offsets = [0, 80], sizes = [1, 8], strides = [1, 1]} : vector<1x128xf32> to vector<1x8xf32>
    %47 = arith.addf %45, %46 : vector<1x8xf32>
    %48 = vector.extract_strided_slice %23 {offsets = [0, 88], sizes = [1, 8], strides = [1, 1]} : vector<1x128xf32> to vector<1x8xf32>
    %49 = arith.addf %47, %48 : vector<1x8xf32>
    %50 = vector.extract_strided_slice %23 {offsets = [0, 96], sizes = [1, 8], strides = [1, 1]} : vector<1x128xf32> to vector<1x8xf32>
    %51 = arith.addf %49, %50 : vector<1x8xf32>
    %52 = vector.extract_strided_slice %23 {offsets = [0, 104], sizes = [1, 8], strides = [1, 1]} : vector<1x128xf32> to vector<1x8xf32>
    %53 = arith.addf %51, %52 : vector<1x8xf32>
    %54 = vector.extract_strided_slice %23 {offsets = [0, 112], sizes = [1, 8], strides = [1, 1]} : vector<1x128xf32> to vector<1x8xf32>
    %55 = arith.addf %53, %54 : vector<1x8xf32>
    %56 = vector.extract_strided_slice %23 {offsets = [0, 120], sizes = [1, 8], strides = [1, 1]} : vector<1x128xf32> to vector<1x8xf32>
    %57 = arith.addf %55, %56 : vector<1x8xf32>
    %cst_14 = arith.constant 0.001953125 : f32
    %58 = vector.broadcast %cst_14 : f32 to vector<1x8xf32>
    %59 = arith.mulf %57, %58 : vector<1x8xf32>
    %60 = vector.extract_strided_slice %26 {offsets = [0, 0], sizes = [1, 8], strides = [1, 1]} : vector<1x128xf32> to vector<1x8xf32>
    %61 = vector.extract_strided_slice %26 {offsets = [0, 8], sizes = [1, 8], strides = [1, 1]} : vector<1x128xf32> to vector<1x8xf32>
    %62 = arith.addf %60, %61 : vector<1x8xf32>
    %63 = vector.extract_strided_slice %26 {offsets = [0, 16], sizes = [1, 8], strides = [1, 1]} : vector<1x128xf32> to vector<1x8xf32>
    %64 = arith.addf %62, %63 : vector<1x8xf32>
    %65 = vector.extract_strided_slice %26 {offsets = [0, 24], sizes = [1, 8], strides = [1, 1]} : vector<1x128xf32> to vector<1x8xf32>
    %66 = arith.addf %64, %65 : vector<1x8xf32>
    %67 = vector.extract_strided_slice %26 {offsets = [0, 32], sizes = [1, 8], strides = [1, 1]} : vector<1x128xf32> to vector<1x8xf32>
    %68 = arith.addf %66, %67 : vector<1x8xf32>
    %69 = vector.extract_strided_slice %26 {offsets = [0, 40], sizes = [1, 8], strides = [1, 1]} : vector<1x128xf32> to vector<1x8xf32>
    %70 = arith.addf %68, %69 : vector<1x8xf32>
    %71 = vector.extract_strided_slice %26 {offsets = [0, 48], sizes = [1, 8], strides = [1, 1]} : vector<1x128xf32> to vector<1x8xf32>
    %72 = arith.addf %70, %71 : vector<1x8xf32>
    %73 = vector.extract_strided_slice %26 {offsets = [0, 56], sizes = [1, 8], strides = [1, 1]} : vector<1x128xf32> to vector<1x8xf32>
    %74 = arith.addf %72, %73 : vector<1x8xf32>
    %75 = vector.extract_strided_slice %26 {offsets = [0, 64], sizes = [1, 8], strides = [1, 1]} : vector<1x128xf32> to vector<1x8xf32>
    %76 = arith.addf %74, %75 : vector<1x8xf32>
    %77 = vector.extract_strided_slice %26 {offsets = [0, 72], sizes = [1, 8], strides = [1, 1]} : vector<1x128xf32> to vector<1x8xf32>
    %78 = arith.addf %76, %77 : vector<1x8xf32>
    %79 = vector.extract_strided_slice %26 {offsets = [0, 80], sizes = [1, 8], strides = [1, 1]} : vector<1x128xf32> to vector<1x8xf32>
    %80 = arith.addf %78, %79 : vector<1x8xf32>
    %81 = vector.extract_strided_slice %26 {offsets = [0, 88], sizes = [1, 8], strides = [1, 1]} : vector<1x128xf32> to vector<1x8xf32>
    %82 = arith.addf %80, %81 : vector<1x8xf32>
    %83 = vector.extract_strided_slice %26 {offsets = [0, 96], sizes = [1, 8], strides = [1, 1]} : vector<1x128xf32> to vector<1x8xf32>
    %84 = arith.addf %82, %83 : vector<1x8xf32>
    %85 = vector.extract_strided_slice %26 {offsets = [0, 104], sizes = [1, 8], strides = [1, 1]} : vector<1x128xf32> to vector<1x8xf32>
    %86 = arith.addf %84, %85 : vector<1x8xf32>
    %87 = vector.extract_strided_slice %26 {offsets = [0, 112], sizes = [1, 8], strides = [1, 1]} : vector<1x128xf32> to vector<1x8xf32>
    %88 = arith.addf %86, %87 : vector<1x8xf32>
    %89 = vector.extract_strided_slice %26 {offsets = [0, 120], sizes = [1, 8], strides = [1, 1]} : vector<1x128xf32> to vector<1x8xf32>
    %90 = arith.addf %88, %89 : vector<1x8xf32>
    %cst_15 = arith.constant 0.001953125 : f32
    %91 = vector.broadcast %cst_15 : f32 to vector<1x8xf32>
    %92 = arith.mulf %90, %91 : vector<1x8xf32>
    %93 = arith.mulf %59, %59 : vector<1x8xf32>
    %94 = arith.subf %92, %93 : vector<1x8xf32>
    %c0_16 = arith.constant 0 : index
    %c0_17 = arith.constant 0 : index
    %95 = vector.load %arg4[%c0_16, %c0_17] : memref<1x8xf32, #tpu.memory_space<vmem>>, vector<1x8xf32>
    %cst_18 = arith.constant 9.99999974E-6 : f32
    %96 = vector.broadcast %cst_18 : f32 to vector<1x8xf32>
    %97 = arith.addf %94, %96 : vector<1x8xf32>
    %98 = math.rsqrt %97 : vector<1x8xf32>
    %99 = arith.mulf %95, %98 : vector<1x8xf32>
    %c0_19 = arith.constant 0 : index
    %c0_20 = arith.constant 0 : index
    %100 = vector.load %arg5[%c0_19, %c0_20] : memref<1x8xf32, #tpu.memory_space<vmem>>, vector<1x8xf32>
    %101 = arith.mulf %59, %99 : vector<1x8xf32>
    %102 = arith.subf %100, %101 : vector<1x8xf32>
    %103 = tpu.concatenate %99, %99, %99, %99, %99, %99, %99, %99, %99, %99, %99, %99, %99, %99, %99, %99 in 1 : vector<1x8xf32>, vector<1x8xf32>, vector<1x8xf32>, vector<1x8xf32>, vector<1x8xf32>, vector<1x8xf32>, vector<1x8xf32>, vector<1x8xf32>, vector<1x8xf32>, vector<1x8xf32>, vector<1x8xf32>, vector<1x8xf32>, vector<1x8xf32>, vector<1x8xf32>, vector<1x8xf32>, vector<1x8xf32> -> vector<1x128xf32>
    %104 = vector.broadcast %103 : vector<1x128xf32> to vector<32x128xf32>
    %105 = arith.mulf %21, %104 : vector<32x128xf32>
    %106 = tpu.concatenate %102, %102, %102, %102, %102, %102, %102, %102, %102, %102, %102, %102, %102, %102, %102, %102 in 1 : vector<1x8xf32>, vector<1x8xf32>, vector<1x8xf32>, vector<1x8xf32>, vector<1x8xf32>, vector<1x8xf32>, vector<1x8xf32>, vector<1x8xf32>, vector<1x8xf32>, vector<1x8xf32>, vector<1x8xf32>, vector<1x8xf32>, vector<1x8xf32>, vector<1x8xf32>, vector<1x8xf32>, vector<1x8xf32> -> vector<1x128xf32>
    %107 = vector.broadcast %106 : vector<1x128xf32> to vector<32x128xf32>
    %108 = arith.addf %105, %107 : vector<32x128xf32>
    %cst_21 = arith.constant 0.000000e+00 : f32
    %109 = vector.broadcast %cst_21 : f32 to vector<32x128xf32>
    %110 = arith.maximumf %108, %109 : vector<32x128xf32>
    %111 = vector.shape_cast %110 : vector<32x128xf32> to vector<2x16x128xf32>
    %cst_22 = arith.constant 0.000000e+00 : f32
    %112 = vector.broadcast %cst_22 : f32 to vector<2x1x128xf32>
    %113 = vector.extract_strided_slice %111 {offsets = [0, 0, 0], sizes = [2, 15, 128], strides = [1, 1, 1]} : vector<2x16x128xf32> to vector<2x15x128xf32>
    %114 = tpu.concatenate %112, %113 in 1 : vector<2x1x128xf32>, vector<2x15x128xf32> -> vector<2x16x128xf32>
    %115 = vector.extract_strided_slice %111 {offsets = [0, 1, 0], sizes = [2, 15, 128], strides = [1, 1, 1]} : vector<2x16x128xf32> to vector<2x15x128xf32>
    %116 = tpu.concatenate %115, %112 in 1 : vector<2x15x128xf32>, vector<2x1x128xf32> -> vector<2x16x128xf32>
    %117 = vector.shape_cast %114 : vector<2x16x128xf32> to vector<32x128xf32>
    %c0_23 = arith.constant 0 : index
    %c0_24 = arith.constant 0 : index
    %c0_25 = arith.constant 0 : index
    %118 = vector.load %arg3[%c0_23, %c0_24, %c0_25] : memref<3x128x128xf32, #tpu.memory_space<vmem>>, vector<1x128x128xf32>
    %119 = vector.shape_cast %118 : vector<1x128x128xf32> to vector<128x128xf32>
    %cst_26 = arith.constant dense<0.000000e+00> : vector<32x128xf32>
    %120 = tpu.matmul %117, %119, %cst_26 {dimension_numbers = #tpu.dot_dimension_numbers<[1], [0], [0], [1], [0, 0, 1, 1], [], []>} : vector<32x128xf32>, vector<128x128xf32>, vector<32x128xf32> -> vector<32x128xf32>
    %121 = vector.shape_cast %111 : vector<2x16x128xf32> to vector<32x128xf32>
    %c1_27 = arith.constant 1 : index
    %c0_28 = arith.constant 0 : index
    %c0_29 = arith.constant 0 : index
    %122 = vector.load %arg3[%c1_27, %c0_28, %c0_29] : memref<3x128x128xf32, #tpu.memory_space<vmem>>, vector<1x128x128xf32>
    %123 = vector.shape_cast %122 : vector<1x128x128xf32> to vector<128x128xf32>
    %cst_30 = arith.constant dense<0.000000e+00> : vector<32x128xf32>
    %124 = tpu.matmul %121, %123, %cst_30 {dimension_numbers = #tpu.dot_dimension_numbers<[1], [0], [0], [1], [0, 0, 1, 1], [], []>} : vector<32x128xf32>, vector<128x128xf32>, vector<32x128xf32> -> vector<32x128xf32>
    %125 = arith.addf %120, %124 : vector<32x128xf32>
    %126 = vector.shape_cast %116 : vector<2x16x128xf32> to vector<32x128xf32>
    %c2_31 = arith.constant 2 : index
    %c0_32 = arith.constant 0 : index
    %c0_33 = arith.constant 0 : index
    %127 = vector.load %arg3[%c2_31, %c0_32, %c0_33] : memref<3x128x128xf32, #tpu.memory_space<vmem>>, vector<1x128x128xf32>
    %128 = vector.shape_cast %127 : vector<1x128x128xf32> to vector<128x128xf32>
    %cst_34 = arith.constant dense<0.000000e+00> : vector<32x128xf32>
    %129 = tpu.matmul %126, %128, %cst_34 {dimension_numbers = #tpu.dot_dimension_numbers<[1], [0], [0], [1], [0, 0, 1, 1], [], []>} : vector<32x128xf32>, vector<128x128xf32>, vector<32x128xf32> -> vector<32x128xf32>
    %130 = arith.addf %125, %129 : vector<32x128xf32>
    %cst_35 = arith.constant dense<0.000000e+00> : vector<128xf32>
    %131 = vector.multi_reduction <add>, %130, %cst_35 [0] : vector<32x128xf32> to vector<128xf32>
    %132 = vector.shape_cast %131 : vector<128xf32> to vector<1x128xf32>
    %133 = arith.mulf %130, %130 : vector<32x128xf32>
    %cst_36 = arith.constant dense<0.000000e+00> : vector<128xf32>
    %134 = vector.multi_reduction <add>, %133, %cst_36 [0] : vector<32x128xf32> to vector<128xf32>
    %135 = vector.shape_cast %134 : vector<128xf32> to vector<1x128xf32>
    %136 = vector.extract_strided_slice %132 {offsets = [0, 0], sizes = [1, 8], strides = [1, 1]} : vector<1x128xf32> to vector<1x8xf32>
    %137 = vector.extract_strided_slice %132 {offsets = [0, 8], sizes = [1, 8], strides = [1, 1]} : vector<1x128xf32> to vector<1x8xf32>
    %138 = arith.addf %136, %137 : vector<1x8xf32>
    %139 = vector.extract_strided_slice %132 {offsets = [0, 16], sizes = [1, 8], strides = [1, 1]} : vector<1x128xf32> to vector<1x8xf32>
    %140 = arith.addf %138, %139 : vector<1x8xf32>
    %141 = vector.extract_strided_slice %132 {offsets = [0, 24], sizes = [1, 8], strides = [1, 1]} : vector<1x128xf32> to vector<1x8xf32>
    %142 = arith.addf %140, %141 : vector<1x8xf32>
    %143 = vector.extract_strided_slice %132 {offsets = [0, 32], sizes = [1, 8], strides = [1, 1]} : vector<1x128xf32> to vector<1x8xf32>
    %144 = arith.addf %142, %143 : vector<1x8xf32>
    %145 = vector.extract_strided_slice %132 {offsets = [0, 40], sizes = [1, 8], strides = [1, 1]} : vector<1x128xf32> to vector<1x8xf32>
    %146 = arith.addf %144, %145 : vector<1x8xf32>
    %147 = vector.extract_strided_slice %132 {offsets = [0, 48], sizes = [1, 8], strides = [1, 1]} : vector<1x128xf32> to vector<1x8xf32>
    %148 = arith.addf %146, %147 : vector<1x8xf32>
    %149 = vector.extract_strided_slice %132 {offsets = [0, 56], sizes = [1, 8], strides = [1, 1]} : vector<1x128xf32> to vector<1x8xf32>
    %150 = arith.addf %148, %149 : vector<1x8xf32>
    %151 = vector.extract_strided_slice %132 {offsets = [0, 64], sizes = [1, 8], strides = [1, 1]} : vector<1x128xf32> to vector<1x8xf32>
    %152 = arith.addf %150, %151 : vector<1x8xf32>
    %153 = vector.extract_strided_slice %132 {offsets = [0, 72], sizes = [1, 8], strides = [1, 1]} : vector<1x128xf32> to vector<1x8xf32>
    %154 = arith.addf %152, %153 : vector<1x8xf32>
    %155 = vector.extract_strided_slice %132 {offsets = [0, 80], sizes = [1, 8], strides = [1, 1]} : vector<1x128xf32> to vector<1x8xf32>
    %156 = arith.addf %154, %155 : vector<1x8xf32>
    %157 = vector.extract_strided_slice %132 {offsets = [0, 88], sizes = [1, 8], strides = [1, 1]} : vector<1x128xf32> to vector<1x8xf32>
    %158 = arith.addf %156, %157 : vector<1x8xf32>
    %159 = vector.extract_strided_slice %132 {offsets = [0, 96], sizes = [1, 8], strides = [1, 1]} : vector<1x128xf32> to vector<1x8xf32>
    %160 = arith.addf %158, %159 : vector<1x8xf32>
    %161 = vector.extract_strided_slice %132 {offsets = [0, 104], sizes = [1, 8], strides = [1, 1]} : vector<1x128xf32> to vector<1x8xf32>
    %162 = arith.addf %160, %161 : vector<1x8xf32>
    %163 = vector.extract_strided_slice %132 {offsets = [0, 112], sizes = [1, 8], strides = [1, 1]} : vector<1x128xf32> to vector<1x8xf32>
    %164 = arith.addf %162, %163 : vector<1x8xf32>
    %165 = vector.extract_strided_slice %132 {offsets = [0, 120], sizes = [1, 8], strides = [1, 1]} : vector<1x128xf32> to vector<1x8xf32>
    %166 = arith.addf %164, %165 : vector<1x8xf32>
    %cst_37 = arith.constant 0.001953125 : f32
    %167 = vector.broadcast %cst_37 : f32 to vector<1x8xf32>
    %168 = arith.mulf %166, %167 : vector<1x8xf32>
    %169 = vector.extract_strided_slice %135 {offsets = [0, 0], sizes = [1, 8], strides = [1, 1]} : vector<1x128xf32> to vector<1x8xf32>
    %170 = vector.extract_strided_slice %135 {offsets = [0, 8], sizes = [1, 8], strides = [1, 1]} : vector<1x128xf32> to vector<1x8xf32>
    %171 = arith.addf %169, %170 : vector<1x8xf32>
    %172 = vector.extract_strided_slice %135 {offsets = [0, 16], sizes = [1, 8], strides = [1, 1]} : vector<1x128xf32> to vector<1x8xf32>
    %173 = arith.addf %171, %172 : vector<1x8xf32>
    %174 = vector.extract_strided_slice %135 {offsets = [0, 24], sizes = [1, 8], strides = [1, 1]} : vector<1x128xf32> to vector<1x8xf32>
    %175 = arith.addf %173, %174 : vector<1x8xf32>
    %176 = vector.extract_strided_slice %135 {offsets = [0, 32], sizes = [1, 8], strides = [1, 1]} : vector<1x128xf32> to vector<1x8xf32>
    %177 = arith.addf %175, %176 : vector<1x8xf32>
    %178 = vector.extract_strided_slice %135 {offsets = [0, 40], sizes = [1, 8], strides = [1, 1]} : vector<1x128xf32> to vector<1x8xf32>
    %179 = arith.addf %177, %178 : vector<1x8xf32>
    %180 = vector.extract_strided_slice %135 {offsets = [0, 48], sizes = [1, 8], strides = [1, 1]} : vector<1x128xf32> to vector<1x8xf32>
    %181 = arith.addf %179, %180 : vector<1x8xf32>
    %182 = vector.extract_strided_slice %135 {offsets = [0, 56], sizes = [1, 8], strides = [1, 1]} : vector<1x128xf32> to vector<1x8xf32>
    %183 = arith.addf %181, %182 : vector<1x8xf32>
    %184 = vector.extract_strided_slice %135 {offsets = [0, 64], sizes = [1, 8], strides = [1, 1]} : vector<1x128xf32> to vector<1x8xf32>
    %185 = arith.addf %183, %184 : vector<1x8xf32>
    %186 = vector.extract_strided_slice %135 {offsets = [0, 72], sizes = [1, 8], strides = [1, 1]} : vector<1x128xf32> to vector<1x8xf32>
    %187 = arith.addf %185, %186 : vector<1x8xf32>
    %188 = vector.extract_strided_slice %135 {offsets = [0, 80], sizes = [1, 8], strides = [1, 1]} : vector<1x128xf32> to vector<1x8xf32>
    %189 = arith.addf %187, %188 : vector<1x8xf32>
    %190 = vector.extract_strided_slice %135 {offsets = [0, 88], sizes = [1, 8], strides = [1, 1]} : vector<1x128xf32> to vector<1x8xf32>
    %191 = arith.addf %189, %190 : vector<1x8xf32>
    %192 = vector.extract_strided_slice %135 {offsets = [0, 96], sizes = [1, 8], strides = [1, 1]} : vector<1x128xf32> to vector<1x8xf32>
    %193 = arith.addf %191, %192 : vector<1x8xf32>
    %194 = vector.extract_strided_slice %135 {offsets = [0, 104], sizes = [1, 8], strides = [1, 1]} : vector<1x128xf32> to vector<1x8xf32>
    %195 = arith.addf %193, %194 : vector<1x8xf32>
    %196 = vector.extract_strided_slice %135 {offsets = [0, 112], sizes = [1, 8], strides = [1, 1]} : vector<1x128xf32> to vector<1x8xf32>
    %197 = arith.addf %195, %196 : vector<1x8xf32>
    %198 = vector.extract_strided_slice %135 {offsets = [0, 120], sizes = [1, 8], strides = [1, 1]} : vector<1x128xf32> to vector<1x8xf32>
    %199 = arith.addf %197, %198 : vector<1x8xf32>
    %cst_38 = arith.constant 0.001953125 : f32
    %200 = vector.broadcast %cst_38 : f32 to vector<1x8xf32>
    %201 = arith.mulf %199, %200 : vector<1x8xf32>
    %202 = arith.mulf %168, %168 : vector<1x8xf32>
    %203 = arith.subf %201, %202 : vector<1x8xf32>
    %c0_39 = arith.constant 0 : index
    %c0_40 = arith.constant 0 : index
    %204 = vector.load %arg6[%c0_39, %c0_40] : memref<1x8xf32, #tpu.memory_space<vmem>>, vector<1x8xf32>
    %cst_41 = arith.constant 9.99999974E-6 : f32
    %205 = vector.broadcast %cst_41 : f32 to vector<1x8xf32>
    %206 = arith.addf %203, %205 : vector<1x8xf32>
    %207 = math.rsqrt %206 : vector<1x8xf32>
    %208 = arith.mulf %204, %207 : vector<1x8xf32>
    %c0_42 = arith.constant 0 : index
    %c0_43 = arith.constant 0 : index
    %209 = vector.load %arg7[%c0_42, %c0_43] : memref<1x8xf32, #tpu.memory_space<vmem>>, vector<1x8xf32>
    %210 = arith.mulf %168, %208 : vector<1x8xf32>
    %211 = arith.subf %209, %210 : vector<1x8xf32>
    %212 = tpu.concatenate %208, %208, %208, %208, %208, %208, %208, %208, %208, %208, %208, %208, %208, %208, %208, %208 in 1 : vector<1x8xf32>, vector<1x8xf32>, vector<1x8xf32>, vector<1x8xf32>, vector<1x8xf32>, vector<1x8xf32>, vector<1x8xf32>, vector<1x8xf32>, vector<1x8xf32>, vector<1x8xf32>, vector<1x8xf32>, vector<1x8xf32>, vector<1x8xf32>, vector<1x8xf32>, vector<1x8xf32>, vector<1x8xf32> -> vector<1x128xf32>
    %213 = vector.broadcast %212 : vector<1x128xf32> to vector<32x128xf32>
    %214 = arith.mulf %130, %213 : vector<32x128xf32>
    %215 = tpu.concatenate %211, %211, %211, %211, %211, %211, %211, %211, %211, %211, %211, %211, %211, %211, %211, %211 in 1 : vector<1x8xf32>, vector<1x8xf32>, vector<1x8xf32>, vector<1x8xf32>, vector<1x8xf32>, vector<1x8xf32>, vector<1x8xf32>, vector<1x8xf32>, vector<1x8xf32>, vector<1x8xf32>, vector<1x8xf32>, vector<1x8xf32>, vector<1x8xf32>, vector<1x8xf32>, vector<1x8xf32>, vector<1x8xf32> -> vector<1x128xf32>
    %216 = vector.broadcast %215 : vector<1x128xf32> to vector<32x128xf32>
    %217 = arith.addf %214, %216 : vector<32x128xf32>
    %218 = arith.addf %1, %217 : vector<32x128xf32>
    %219 = vector.shape_cast %218 : vector<32x128xf32> to vector<2x16x128xf32>
    %c0_44 = arith.constant 0 : index
    %c0_45 = arith.constant 0 : index
    %c0_46 = arith.constant 0 : index
    %220 = vector.load %arg8[%c0_44, %c0_45, %c0_46] : memref<2x16x128xf32, #tpu.memory_space<vmem>>, vector<2x16x128xf32>
    tpu.vector_store %arg8[%c0_44, %c0_45, %c0_46], %219 {strides = array<i32>} : memref<2x16x128xf32, #tpu.memory_space<vmem>>, vector<2x16x128xf32>,
    return
  }
  func.func @transform_0(%arg0: i32) -> (i32, i32, i32) {
    %c0_i32 = arith.constant 0 : i32
    %c0_i32_0 = arith.constant 0 : i32
    %c0_i32_1 = arith.constant 0 : i32
    %c0_i32_2 = arith.constant 0 : i32
    return %c0_i32, %c0_i32_0, %c0_i32_1 : i32, i32, i32
  }
  func.func @transform_1(%arg0: i32) -> (i32, i32, i32) {
    %c0_i32 = arith.constant 0 : i32
    %c0_i32_0 = arith.constant 0 : i32
    %c0_i32_1 = arith.constant 0 : i32
    %c0_i32_2 = arith.constant 0 : i32
    return %c0_i32, %c0_i32_0, %c0_i32_1 : i32, i32, i32
  }
  func.func @transform_2(%arg0: i32) -> (i32, i32, i32) {
    %c0_i32 = arith.constant 0 : i32
    %c0_i32_0 = arith.constant 0 : i32
    %c0_i32_1 = arith.constant 0 : i32
    %c0_i32_2 = arith.constant 0 : i32
    return %c0_i32, %c0_i32_0, %c0_i32_1 : i32, i32, i32
  }
  func.func @transform_3(%arg0: i32) -> (i32, i32) {
    %c0_i32 = arith.constant 0 : i32
    %c0_i32_0 = arith.constant 0 : i32
    %c0_i32_1 = arith.constant 0 : i32
    return %c0_i32, %c0_i32_0 : i32, i32
  }
  func.func @transform_4(%arg0: i32) -> (i32, i32) {
    %c0_i32 = arith.constant 0 : i32
    %c0_i32_0 = arith.constant 0 : i32
    %c0_i32_1 = arith.constant 0 : i32
    return %c0_i32, %c0_i32_0 : i32, i32
  }
  func.func @transform_5(%arg0: i32) -> (i32, i32) {
    %c0_i32 = arith.constant 0 : i32
    %c0_i32_0 = arith.constant 0 : i32
    %c0_i32_1 = arith.constant 0 : i32
    return %c0_i32, %c0_i32_0 : i32, i32
  }
  func.func @transform_6(%arg0: i32) -> (i32, i32) {
    %c0_i32 = arith.constant 0 : i32
    %c0_i32_0 = arith.constant 0 : i32
    %c0_i32_1 = arith.constant 0 : i32
    return %c0_i32, %c0_i32_0 : i32, i32
  }
  func.func @transform_7(%arg0: i32) -> (i32, i32, i32) {
    %c0_i32 = arith.constant 0 : i32
    %c0_i32_0 = arith.constant 0 : i32
    %c0_i32_1 = arith.constant 0 : i32
    %c0_i32_2 = arith.constant 0 : i32
    return %c0_i32, %c0_i32_0, %c0_i32_1 : i32, i32, i32
  }
}

</mosaic_0001>

<bundles_post_ra>
// kernel: residual_block.1
= control target key start
LH: loop header
LB: loop body
LE: loop exit
PB: predicated region body
PF: predicated region fallthrough
CT: control target
= control target key end

     0   :  { %vm34_vm0 = vcmask 1040384   ;;  %vm47_vm2 = vcmask 1046528   ;;  %s1995_s13 = smov 120   ;;  %s1996_s14 = smov 96   ;;  %vm574_vm3 = vcmask 64512   ;;  %vm576_vm4 = vcmask 130048   ;;  %s2741_s1 = inlined_call_operand.vmem [shape: f32[3,128,128], index: 1, kind: input, shape index: {}]   ;;  %s2742_s0 = inlined_call_operand.vmem [shape: f32[2,16,128], index: 0, kind: input, shape index: {}]   ;;  %s2743_s3 = inlined_call_operand.vmem [shape: f32[1,8], index: 3, kind: input, shape index: {}]   ;;  %s2744_s4 = inlined_call_operand.vmem [shape: f32[1,8], index: 4, kind: input, shape index: {}]   ;;  %s2745_s2 = inlined_call_operand.vmem [shape: f32[3,128,128], index: 2, kind: input, shape index: {}]   ;;  %s2746_s5 = inlined_call_operand.vmem [shape: f32[1,8], index: 5, kind: input, shape index: {}]   ;;  %s2747_s6 = inlined_call_operand.vmem [shape: f32[1,8], index: 6, kind: input, shape index: {}]   ;;  %s2748_s7 = inlined_call_operand.vmem [shape: f32[2,16,128], index: 7, kind: output, shape index: {}]  }
   0x1   :  { %v1339_v0 = vld [vmem:[%s2741_s1 + $0x80] sm:$0xff]  ;;  %v1340_v1 = vld [vmem:[%s2741_s1 + $0x88] sm:$0xff]  ;;  %v1341_v2 = vld [vmem:[%s2741_s1 + $0x90] sm:$0xff]  ;;  %s1997_s15 = smov 112   ;;  %s1998_s16 = smov 88   ;;  %vm2749_vm5 = vcmask 195584  }
   0x2   :  { %v1763_v3 = vpack.c.bf16 %v1340_v1, %v1339_v0  ;;  %v1342_v4 = vld [vmem:[%s2741_s1 + $0x98] sm:$0xff]  ;;  %v1343_v6 = vld [vmem:[%s2741_s1 + $0xa0] sm:$0xff]  ;;  %v1344_v7 = vld [vmem:[%s2741_s1 + $0xa8] sm:$0xff]  ;;  %s1999_s17 = smov 80   ;;  %s2000_s18 = smov 72   ;;  %vm2750_vm6 = vcmask 261120  }
   0x3   :  { %v1767_v5 = vpack.c.bf16 %v1342_v4, %v1341_v2  ;;  %v1771_v8 = vpack.c.bf16 %v1344_v7, %v1343_v6  ;;  %v2070_v9 = vld [vmem:[%s2742_s0] sm:$0xff]  ;;  %v1345_v10 = vld [vmem:[%s2741_s1 + $0xb0] sm:$0xff]  ;;  %v1346_v11 = vld [vmem:[%s2741_s1 + $0xb8] sm:$0xff]  ;;  %s2001_s19 = smov 64   ;;  %s2002_s20 = smov 56   ;;  %vm582_vm7 = vcmask 326656  }
   0x4   :  { %1764 = vmatprep.subr.bf16.mxu0 %v1763_v3  ;;  %1567 = vmatprep.mubr.f32.mxu0 %v2070_v9  ;;  %v1775_v12 = vpack.c.bf16 %v1346_v11, %v1345_v10  ;;  %v1347_v13 = vld [vmem:[%s2741_s1 + $0xc0] sm:$0xff]  ;;  %v1348_v14 = vld [vmem:[%s2741_s1 + $0xc8] sm:$0xff]  ;;  %v1349_v16 = vld [vmem:[%s2741_s1 + $0xd0] sm:$0xff]  ;;  %v35_v36 = vrot.slane %v2070_v9, 7  ;;  %v48_v0 = vrot.slane %v2070_v9, 1  ;;  %s2003_s21 = smov 48  }
   0x5   :  { %1766 = vmatpush3.bf16.msra.mxu0 %v1763_v3  ;;  %v1779_v15 = vpack.c.bf16 %v1348_v14, %v1347_v13  ;;  %v1350_v17 = vld [vmem:[%s2741_s1 + $0xd8] sm:$0xff]  ;;  %v1351_v19 = vld [vmem:[%s2741_s1 + $0xe0] sm:$0xff]  ;;  %v1352_v20 = vld [vmem:[%s2741_s1 + $0xe8] sm:$0xff]  ;;  %s2004_s22 = smov 40   ;;  %s2005_s23 = smov 32   ;;  %vm584_vm8 = vcmask 392192  }
   0x6   :  { %1768 = vmatprep.subr.bf16.mxu0 %v1767_v5  ;;  %v1783_v18 = vpack.c.bf16 %v1350_v17, %v1349_v16  ;;  %v1787_v21 = vpack.c.bf16 %v1352_v20, %v1351_v19  ;;  %v1353_v22 = vld [vmem:[%s2741_s1 + $0xf0] sm:$0xff]  ;;  %v1354_v23 = vld [vmem:[%s2741_s1 + $0xf8] sm:$0xff]  ;;  %v60_v25 = vld [vmem:[%s2741_s1] sm:$0xff]  ;;  %s2006_s24 = smov 24   ;;  %s2007_s25 = smov 16   ;;  %vm586_vm9 = vcmask 457728  }
   0x7   :  { %v1791_v24 = vpack.c.bf16 %v1354_v23, %v1353_v22  ;;  %v61_v26 = vld [vmem:[%s2741_s1 + $0x8] sm:$0xff]  ;;  %v62_v28 = vld [vmem:[%s2741_s1 + $0x10] sm:$0xff]  ;;  %v63_v29 = vld [vmem:[%s2741_s1 + $0x18] sm:$0xff]  ;;  %s2008_s26 = smov 8   ;;  %vm588_vm10 = vcmask 523264   ;;  %vm590_vm11 = vcmask 588800  }
   0x8   :  { %v1795_v27 = vpack.c.bf16 %v61_v26, %v60_v25  ;;  %v2118_v30 = vld [vmem:[%s2742_s0 + $0x8] sm:$0xff]  ;;  %v1799_v31 = vpack.c.bf16 %v63_v29, %v62_v28  ;;  %v2123_v32 = vld [vmem:[%s2742_s0 + $0x10] sm:$0xff]  ;;  %v64_v33 = vld [vmem:[%s2741_s1 + $0x20] sm:$0xff]  ;;  %vm592_vm12 = vcmask 654336   ;;  %vm594_vm13 = vcmask 719872  }
   0x9   :  { %1770 = vmatpush3.bf16.msra.mxu0 %v1767_v5  ;;  %v65_v34 = vld [vmem:[%s2741_s1 + $0x28] sm:$0xff]  ;;  %v2136_v35 = vld [vmem:[%s2742_s0 + $0x18] sm:$0xff]  ;;  %vm2140_vm1 = vmneg %vm34_vm0  ;;  %v36_v56 = vrot.slane %v2118_v30, 7  ;;  %v38_v61 = vrot.slane %v2123_v32, 7  ;;  %v49_v1 = vrot.slane %v2118_v30, 1  ;;  %v51_v22 = vrot.slane %v2123_v32, 1 }
   0xa   :  { %1772 = vmatprep.subr.bf16.mxu0 %v1771_v8  ;;  %v1803_v37 = vpack.c.bf16 %v65_v34, %v64_v33  ;;  %v66_v39 = vld [vmem:[%s2741_s1 + $0x30] sm:$0xff]  ;;  %v67_v40 = vld [vmem:[%s2741_s1 + $0x38] sm:$0xff]  ;;  %v68_v42 = vld [vmem:[%s2741_s1 + $0x40] sm:$0xff]  ;;  %v39_v62 = vrot.slane %v2136_v35, 7  ;;  %v52_v23 = vrot.slane %v2136_v35, 1  ;;  %vm596_vm14 = vcmask 785408  }
   0xb   :  { %v1807_v41 = vpack.c.bf16 %v67_v40, %v66_v39  ;;  %v69_v43 = vld [vmem:[%s2741_s1 + $0x48] sm:$0xff]  ;;  %v70_v45 = vld [vmem:[%s2741_s1 + $0x50] sm:$0xff]  ;;  %v71_v46 = vld [vmem:[%s2741_s1 + $0x58] sm:$0xff]  ;;  %v37_v60 = vsel %vm34_vm0, %v35_v36, %v36_v56  ;;  %v50_v6 = vsel %vm47_vm2, %v48_v0, %v49_v1  ;;  %vm598_vm15 = vcmask 850944  }
   0xc   :  { %v1811_v44 = vpack.c.bf16 %v69_v43, %v68_v42  ;;  %v1815_v47 = vpack.c.bf16 %v71_v46, %v70_v45  ;;  %v72_v48 = vld [vmem:[%s2741_s1 + $0x60] sm:$0xff]  ;;  %v73_v49 = vld [vmem:[%s2741_s1 + $0x68] sm:$0xff]  ;;  %v74_v51 = vld [vmem:[%s2741_s1 + $0x70] sm:$0xff]  ;;  %v40_v4 = vsel %vm34_vm0, %v38_v61, %v39_v62 }
   0xd   :  { %1774 = vmatpush3.bf16.msra.mxu0 %v1771_v8  ;;  %v1819_v50 = vpack.c.bf16 %v73_v49, %v72_v48  ;;  %v75_v52 = vld [vmem:[%s2741_s1 + $0x78] sm:$0xff]  ;;  %v1359_v54 = vld [vmem:[%s2741_s1 + $0x100] sm:$0xff]  ;;  %v1360_v55 = vld [vmem:[%s2741_s1 + $0x108] sm:$0xff] }
   0xe   :  { %1776 = vmatprep.subr.bf16.mxu0 %v1775_v12  ;;  %v1823_v53 = vpack.c.bf16 %v75_v52, %v74_v51  ;;  %v1827_v57 = vpack.c.bf16 %v1360_v55, %v1359_v54  ;;  %v1361_v58 = vld [vmem:[%s2741_s1 + $0x110] sm:$0xff]  ;;  %v1362_v59 = vld [vmem:[%s2741_s1 + $0x118] sm:$0xff]  ;;  %v1363_v2 = vld [vmem:[%s2741_s1 + $0x120] sm:$0xff] }
   0xf   :  { %v1831_v63 = vpack.c.bf16 %v1362_v59, %v1361_v58  ;;  %v1364_v3 = vld [vmem:[%s2741_s1 + $0x128] sm:$0xff]  ;;  %v1365_v7 = vld [vmem:[%s2741_s1 + $0x130] sm:$0xff]  ;;  %v1366_v8 = vld [vmem:[%s2741_s1 + $0x138] sm:$0xff] }
  0x10   :  { %v1835_v5 = vpack.c.bf16 %v1364_v3, %v1363_v2  ;;  %v1839_v9 = vpack.c.bf16 %v1366_v8, %v1365_v7  ;;  %v1367_v10 = vld [vmem:[%s2741_s1 + $0x140] sm:$0xff]  ;;  %v1368_v11 = vld [vmem:[%s2741_s1 + $0x148] sm:$0xff]  ;;  %v1369_v13 = vld [vmem:[%s2741_s1 + $0x150] sm:$0xff] }
  0x11   :  { %1778 = vmatpush3.bf16.msra.mxu0 %v1775_v12  ;;  %v1843_v12 = vpack.c.bf16 %v1368_v11, %v1367_v10  ;;  %v1370_v14 = vld [vmem:[%s2741_s1 + $0x158] sm:$0xff]  ;;  %v1371_v16 = vld [vmem:[%s2741_s1 + $0x160] sm:$0xff]  ;;  %v1372_v17 = vld [vmem:[%s2741_s1 + $0x168] sm:$0xff] }
  0x12   :  { %1780 = vmatprep.subr.bf16.mxu0 %v1779_v15  ;;  %v1373_v19 = vld [vmem:[%s2741_s1 + $0x170] sm:$0xff]  ;;  %v1374_v20 = vld [vmem:[%s2741_s1 + $0x178] sm:$0xff]  ;;  %s1994_s1 = smov 104   ;;  %v1405_v38 = vld [vmem:[%s2745_s2 + $0x140] sm:$0xff] }
  0x15   :  { %1782 = vmatpush3.bf16.msra.mxu0 %v1779_v15  ;;  %v1847_v15 = vpack.c.bf16 %v1370_v14, %v1369_v13 }
  0x16   :  { %1784 = vmatprep.subr.bf16.mxu0 %v1783_v18 }
  0x19   :  { %1786 = vmatpush3.bf16.msra.mxu0 %v1783_v18  ;;  %v1851_v18 = vpack.c.bf16 %v1372_v17, %v1371_v16 }
  0x1a   :  { %1788 = vmatprep.subr.bf16.mxu0 %v1787_v21 }
  0x1d   :  { %1790 = vmatpush3.bf16.msra.mxu0 %v1787_v21  ;;  %v1855_v21 = vpack.c.bf16 %v1374_v20, %v1373_v19 }
  0x1e   :  { %1792 = vmatprep.subr.bf16.mxu0 %v1791_v24 }
  0x21   :  { %1794 = vmatpush3.bf16.msra.mxu0 %v1791_v24  ;;  %v53_v24 = vsel %vm47_vm2, %v51_v22, %v52_v23 }
  0x22   :  { %1796 = vmatprep.subr.bf16.mxu0 %v1795_v27 }
  0x24   :  { %1568 = vmatmul.mubr.f32.vlgmr.msra.gmra.mrb[0].mxu0 %v2118_v30 }
  0x25   :  { %1798 = vmatpush3.bf16.msra.mxu0 %v1795_v27  ;;  %1570 = vmatprep.mubr.f32.mxu0 %v2123_v32 }
  0x26   :  { %1800 = vmatprep.subr.bf16.mxu0 %v1799_v31 }
  0x28   :  { %1571 = vmatmul.mubr.f32.gmra.mrb[2].mxu0 %v2136_v35 }
  0x29   :  { %1802 = vmatpush3.bf16.msra.mxu0 %v1799_v31  ;;  %1605 = vmatprep.mubr.msk.f32.mxu0 %vm2140_vm1, %v35_v36 }
  0x2a   :  { %1804 = vmatprep.subr.bf16.mxu0 %v1803_v37 }
  0x2d   :  { %1806 = vmatpush3.bf16.msra.mxu0 %v1803_v37 }
  0x2e   :  { %1808 = vmatprep.subr.bf16.mxu0 %v1807_v41 }
  0x31   :  { %1810 = vmatpush3.bf16.msra.mxu0 %v1807_v41 }
  0x32   :  { %1812 = vmatprep.subr.bf16.mxu0 %v1811_v44 }
  0x35   :  { %1814 = vmatpush3.bf16.msra.mxu0 %v1811_v44 }
  0x36   :  { %1816 = vmatprep.subr.bf16.mxu0 %v1815_v47 }
  0x39   :  { %1818 = vmatpush3.bf16.msra.mxu0 %v1815_v47 }
  0x3a   :  { %1820 = vmatprep.subr.bf16.mxu0 %v1819_v50 }
  0x3d   :  { %1822 = vmatpush3.bf16.msra.mxu0 %v1819_v50 }
  0x3e   :  { %1824 = vmatprep.subr.bf16.mxu0 %v1823_v53 }
  0x41   :  { %1826 = vmatpush3.bf16.msra.mxu0 %v1823_v53 }
  0x42   :  { %1828 = vmatprep.subr.bf16.mxu0 %v1827_v57 }
  0x44   :  { %1606 = vmatmul.mubr.f32.vlgmr.msra.gmra.mrb[0].mxu0 %v37_v60 }
  0x45   :  { %1830 = vmatpush3.bf16.msra.mxu0 %v1827_v57  ;;  %1608 = vmatprep.mubr.msk.f32.mxu0 %vm2140_vm1, %v38_v61 }
  0x46   :  { %1832 = vmatprep.subr.bf16.mxu0 %v1831_v63 }
  0x48   :  { %1609 = vmatmul.mubr.f32.gmra.mrb[2].mxu0 %v40_v4 }
  0x49   :  { %1834 = vmatpush3.bf16.msra.mxu0 %v1831_v63  ;;  %1643 = vmatprep.mubr.f32.mxu0 %v50_v6 }
  0x4a   :  { %1836 = vmatprep.subr.bf16.mxu0 %v1835_v5 }
  0x4d   :  { %1838 = vmatpush3.bf16.msra.mxu0 %v1835_v5 }
  0x4e   :  { %1840 = vmatprep.subr.bf16.mxu0 %v1839_v9 }
  0x51   :  { %1842 = vmatpush3.bf16.msra.mxu0 %v1839_v9 }
  0x52   :  { %1844 = vmatprep.subr.bf16.mxu0 %v1843_v12 }
  0x55   :  { %1846 = vmatpush3.bf16.msra.mxu0 %v1843_v12 }
  0x56   :  { %1848 = vmatprep.subr.bf16.mxu0 %v1847_v15 }
  0x59   :  { %1850 = vmatpush3.bf16.msra.mxu0 %v1847_v15 }
  0x5a   :  { %1852 = vmatprep.subr.bf16.mxu0 %v1851_v18 }
  0x5d   :  { %1854 = vmatpush3.bf16.msra.mxu0 %v1851_v18 }
  0x5e   :  { %1856 = vmatprep.subr.bf16.mxu0 %v1855_v21 }
  0x61   :  { %1858 = vmatpush3.bf16.msra.mxu0 %v1855_v21 }
  0x64   :  { %1644 = vmatmul.mubr.msk.f32.vlgmr.msra.gmra.mrb[0].mxu0 %vm47_vm2, %v49_v1 }
  0x65   :  { %1646 = vmatprep.mubr.f32.mxu0 %v53_v24 }
  0x68   :  { %1647 = vmatmul.mubr.msk.f32.gmra.mrb[2].mxu0 %vm47_vm2, %v52_v23 }
 0x137   :  { %v2240_v25 = vpop.f32.mrb[0].mxu0 }
 0x138   :  { %v379_v26 = vmul.f32 %v2240_v25, %v2240_v25  ;;  %v2244_v27 = vpop.f32.mrb[1].mxu0 }
 0x139   :  { %v369_v28 = vadd.f32 %v2240_v25, %v2244_v27  ;;  %v378_v29 = vmul.f32 %v2244_v27, %v2244_v27 }
 0x13b   :  { %v382_v30 = vadd.f32 %v379_v26, %v378_v29  ;;  %v2250_v31 = vpop.f32.mrb[2].mxu0 }
 0x13c   :  { %v2252_v32 = vpop.f32.mrb[3].mxu0  ;;  %v381_v35 = vmul.f32 %v2250_v31, %v2250_v31 }
 0x13d   :  { %v370_v33 = vadd.f32 %v369_v28, %v2252_v32  ;;  %v380_v34 = vmul.f32 %v2252_v32, %v2252_v32 }
 0x13f   :  { %v371_v36 = vadd.f32 %v2250_v31, %v370_v33  ;;  %v383_v37 = vadd.f32 %v382_v30, %v380_v34 }
 0x141   :  { %v372_v39 = vrot.slane %v371_v36, 4  ;;  %v384_v40 = vadd.f32 %v383_v37, %v381_v35 }
 0x143   :  { %v373_v41 = vadd.f32 %v372_v39, %v371_v36  ;;  %v385_v42 = vrot.slane %v384_v40, 4 }
 0x145   :  { %v374_v43 = vrot.slane %v373_v41, 2  ;;  %v386_v44 = vadd.f32 %v385_v42, %v384_v40 }
 0x147   :  { %v375_v45 = vadd.f32 %v374_v43, %v373_v41  ;;  %v387_v46 = vrot.slane %v386_v44, 2 }
 0x149   :  { %v376_v47 = vrot.slane %v375_v45, 1  ;;  %v388_v49 = vadd.f32 %v387_v46, %v386_v44 }
 0x14b   :  { %v377_v48 = vadd.f32 %v376_v47, %v375_v45  ;;  %v389_v50 = vrot.slane %v388_v49, 1 }
 0x14d   :  { %400 = vrot.lane.b32.xlu1 %v377_v48, %s1994_s1  ;;  %392 = vrot.lane.b32.xlu0 %v377_v48, %s1995_s13  ;;  %v390_v51 = vadd.f32 %v389_v50, %v388_v49 }
 0x151   :  { %404 = vrot.lane.b32.xlu1 %v377_v48, %s1996_s14  ;;  %396 = vrot.lane.b32.xlu0 %v377_v48, %s1997_s15 }
 0x155   :  { %408 = vrot.lane.b32.xlu1 %v377_v48, %s1998_s16  ;;  %458 = vrot.lane.b32.xlu0 %v390_v51, %s1997_s15 }
 0x159   :  { %412 = vrot.lane.b32.xlu1 %v377_v48, %s1999_s17  ;;  %462 = vrot.lane.b32.xlu0 %v390_v51, %s1994_s1 }
 0x15d   :  { %416 = vrot.lane.b32.xlu1 %v377_v48, %s2000_s18  ;;  %466 = vrot.lane.b32.xlu0 %v390_v51, %s1996_s14 }
 0x161   :  { %420 = vrot.lane.b32.xlu1 %v377_v48, %s2001_s19  ;;  %470 = vrot.lane.b32.xlu0 %v390_v51, %s1998_s16 }
 0x165   :  { %424 = vrot.lane.b32.xlu1 %v377_v48, %s2002_s20  ;;  %474 = vrot.lane.b32.xlu0 %v390_v51, %s1999_s17 }
 0x169   :  { %454 = vrot.lane.b32.xlu1 %v390_v51, %s1995_s13  ;;  %478 = vrot.lane.b32.xlu0 %v390_v51, %s2000_s18 }
 0x16d   :  { %428 = vrot.lane.b32.xlu1 %v377_v48, %s2003_s21  ;;  %482 = vrot.lane.b32.xlu0 %v390_v51, %s2001_s19 }
 0x171   :  { %432 = vrot.lane.b32.xlu1 %v377_v48, %s2004_s22  ;;  %486 = vrot.lane.b32.xlu0 %v390_v51, %s2002_s20 }
 0x175   :  { %436 = vrot.lane.b32.xlu1 %v377_v48, %s2005_s23  ;;  %490 = vrot.lane.b32.xlu0 %v390_v51, %s2003_s21 }
 0x179   :  { %440 = vrot.lane.b32.xlu1 %v377_v48, %s2006_s24  ;;  %494 = vrot.lane.b32.xlu0 %v390_v51, %s2004_s22 }
 0x17d   :  { %444 = vrot.lane.b32.xlu1 %v377_v48, %s2007_s25  ;;  %498 = vrot.lane.b32.xlu0 %v390_v51, %s2005_s23 }
 0x181   :  { %448 = vrot.lane.b32.xlu1 %v377_v48, %s2008_s26  ;;  %502 = vrot.lane.b32.xlu0 %v390_v51, %s2006_s24 }
 0x185   :  { %510 = vrot.lane.b32.xlu1 %v390_v51, %s2008_s26  ;;  %506 = vrot.lane.b32.xlu0 %v390_v51, %s2007_s25 }
 0x1bf   :  { %v401_v52 = vpop.permute.xlu1 %400  ;;  %v393_v53 = vpop.permute.xlu0 %392 }
 0x1c0   :  { %v395_v62 = vadd.f32 %v393_v53, %v377_v48 }
 0x1c3   :  { %v405_v54 = vpop.permute.xlu1 %404  ;;  %v397_v55 = vpop.permute.xlu0 %396 }
 0x1c4   :  { %v399_v63 = vadd.f32 %v397_v55, %v395_v62 }
 0x1c6   :  { %v403_v2 = vadd.f32 %v401_v52, %v399_v63 }
 0x1c7   :  { %v409_v56 = vpop.permute.xlu1 %408  ;;  %v459_v57 = vpop.permute.xlu0 %458 }
 0x1c8   :  { %v407_v5 = vadd.f32 %v405_v54, %v403_v2 }
 0x1ca   :  { %v411_v9 = vadd.f32 %v409_v56, %v407_v5  ;;  %v1377_v5 = vld [vmem:[%s2745_s2 + $0x80] sm:$0xff] }
 0x1cb   :  { %v413_v58 = vpop.permute.xlu1 %412  ;;  %v463_v59 = vpop.permute.xlu0 %462 }
 0x1cc   :  { %v415_v14 = vadd.f32 %v413_v58, %v411_v9  ;;  %v525_v58 = vlaneseq  ;;  %v1380_v9 = vld [vmem:[%s2745_s2 + $0x98] sm:$0xff] }
 0x1cf   :  { %v417_v60 = vpop.permute.xlu1 %416  ;;  %v467_v61 = vpop.permute.xlu0 %466 }
 0x1d0   :  { %v419_v18 = vadd.f32 %v417_v60, %v415_v14  ;;  %v517_v60 = vld [vmem:[%s2743_s3] sm:$0x1]  ;;  %v1383_v14 = vld [vmem:[%s2745_s2 + $0xb0] sm:$0xff] }
 0x1d3   :  { %v421_v0 = vpop.permute.xlu1 %420  ;;  %v471_v1 = vpop.permute.xlu0 %470 }
 0x1d4   :  { %v423_v20 = vadd.f32 %v421_v0, %v419_v18  ;;  %v521_v0 = vld [vmem:[%s2744_s4] sm:$0x1]  ;;  %v1386_v18 = vld [vmem:[%s2745_s2 + $0xc8] sm:$0xff] }
 0x1d7   :  { %v425_v3 = vpop.permute.xlu1 %424  ;;  %v475_v4 = vpop.permute.xlu0 %474 }
 0x1d8   :  { %v427_v24 = vadd.f32 %v425_v3, %v423_v20  ;;  %v1387_v20 = vld [vmem:[%s2745_s2 + $0xd0] sm:$0xff] }
 0x1db   :  { %v455_v6 = vpop.permute.xlu1 %454  ;;  %v479_v7 = vpop.permute.xlu0 %478 }
 0x1dc   :  { %v457_v8 = vadd.f32 %v455_v6, %v390_v51  ;;  %v1378_v6 = vld [vmem:[%s2745_s2 + $0x88] sm:$0xff] }
 0x1de   :  { %v461_v10 = vadd.f32 %v459_v57, %v457_v8  ;;  %v1379_v8 = vld [vmem:[%s2745_s2 + $0x90] sm:$0xff] }
 0x1df   :  { %v429_v11 = vpop.permute.xlu1 %428  ;;  %v483_v12 = vpop.permute.xlu0 %482 }
 0x1e0   :  { %v465_v13 = vadd.f32 %v463_v59, %v461_v10  ;;  %v431_v28 = vadd.f32 %v429_v11, %v427_v24  ;;  %v526_v59 = vshrl.u32 %v525_v58, 7  ;;  %v1863_v10 = vpack.c.bf16 %v1380_v9, %v1379_v8  ;;  %v1381_v11 = vld [vmem:[%s2745_s2 + $0xa0] sm:$0xff]  ;;  %v1390_v24 = vld [vmem:[%s2745_s2 + $0xe8] sm:$0xff] }
 0x1e2   :  { %v469_v15 = vadd.f32 %v467_v61, %v465_v13  ;;  %v2293_v61 = vsub.s32 0, %v526_v59 }
 0x1e3   :  { %v433_v16 = vpop.permute.xlu1 %432  ;;  %v487_v17 = vpop.permute.xlu0 %486 }
 0x1e4   :  { %v473_v19 = vadd.f32 %v471_v1, %v469_v15  ;;  %v435_v34 = vadd.f32 %v433_v16, %v431_v28  ;;  %v1384_v15 = vld [vmem:[%s2745_s2 + $0xb8] sm:$0xff]  ;;  %v1391_v28 = vld [vmem:[%s2745_s2 + $0xf0] sm:$0xff] }
 0x1e5   :  { %v1871_v16 = vpack.c.bf16 %v1384_v15, %v1383_v14 }
 0x1e6   :  { %v477_v21 = vadd.f32 %v475_v4, %v473_v19 }
 0x1e7   :  { %v437_v22 = vpop.permute.xlu1 %436  ;;  %v491_v23 = vpop.permute.xlu0 %490 }
 0x1e8   :  { %v481_v26 = vadd.f32 %v479_v7, %v477_v21  ;;  %v439_v36 = vadd.f32 %v437_v22, %v435_v34  ;;  %v1859_v7 = vpack.c.bf16 %v1378_v6, %v1377_v5  ;;  %v1388_v21 = vld [vmem:[%s2745_s2 + $0xd8] sm:$0xff]  ;;  %v718_v34 = vld [vmem:[%s2745_s2 + $0x8] sm:$0xff] }
 0x1e9   :  { %v1879_v22 = vpack.c.bf16 %v1388_v21, %v1387_v20 }
 0x1ea   :  { %v485_v29 = vadd.f32 %v483_v12, %v481_v26  ;;  %1860 = vmatprep.subr.bf16.mxu1 %v1859_v7  ;;  %v1382_v12 = vld [vmem:[%s2745_s2 + $0xa8] sm:$0xff] }
 0x1eb   :  { %v441_v30 = vpop.permute.xlu1 %440  ;;  %v495_v33 = vpop.permute.xlu0 %494  ;;  %1862 = vmatpush3.bf16.msra.mxu1 %v1859_v7  ;;  %v1867_v13 = vpack.c.bf16 %v1382_v12, %v1381_v11 }
 0x1ec   :  { %v489_v35 = vadd.f32 %v487_v17, %v485_v29  ;;  %v443_v41 = vadd.f32 %v441_v30, %v439_v36  ;;  %1864 = vmatprep.subr.bf16.mxu1 %v1863_v10  ;;  %v1385_v17 = vld [vmem:[%s2745_s2 + $0xc0] sm:$0xff]  ;;  %v1392_v29 = vld [vmem:[%s2745_s2 + $0xf8] sm:$0xff] }
 0x1ed   :  { %v1875_v19 = vpack.c.bf16 %v1386_v18, %v1385_v17  ;;  %v1887_v30 = vpack.c.bf16 %v1392_v29, %v1391_v28 }
 0x1ee   :  { %v493_v37 = vadd.f32 %v491_v23, %v489_v35  ;;  %v1389_v23 = vld [vmem:[%s2745_s2 + $0xe0] sm:$0xff] }
 0x1ef   :  { %v445_v39 = vpop.permute.xlu1 %444  ;;  %v499_v40 = vpop.permute.xlu0 %498  ;;  %1866 = vmatpush3.bf16.msra.mxu1 %v1863_v10  ;;  %v1883_v26 = vpack.c.bf16 %v1390_v24, %v1389_v23 }
 0x1f0   :  { %v497_v42 = vadd.f32 %v495_v33, %v493_v37  ;;  %v447_v43 = vadd.f32 %v445_v39, %v443_v41  ;;  %1868 = vmatprep.subr.bf16.mxu1 %v1867_v13  ;;  %v717_v33 = vld [vmem:[%s2745_s2] sm:$0xff] }
 0x1f1   :  { %v2417_v35 = vpack.c.bf16 %v718_v34, %v717_v33 }
 0x1f2   :  { %v501_v44 = vadd.f32 %v499_v40, %v497_v42 }
 0x1f3   :  { %v449_v45 = vpop.permute.xlu1 %448  ;;  %v503_v46 = vpop.permute.xlu0 %502  ;;  %1870 = vmatpush3.bf16.msra.mxu1 %v1867_v13 }
 0x1f4   :  { %v451_v47 = vadd.f32 %v449_v45, %v447_v43  ;;  %v505_v48 = vadd.f32 %v503_v46, %v501_v44  ;;  %1872 = vmatprep.subr.bf16.mxu1 %v1871_v16 }
 0x1f6   :  { %v452_v50 = vmul.f32 0.001953125, %v451_v47 }
 0x1f7   :  { %v507_v49 = vpop.permute.xlu0 %506  ;;  %v511_v52 = vpop.permute.xlu1 %510  ;;  %1874 = vmatpush3.bf16.msra.mxu1 %v1871_v16 }
 0x1f8   :  { %v509_v51 = vadd.f32 %v507_v49, %v505_v48  ;;  %v515_v54 = vmul.f32 %v452_v50, %v452_v50  ;;  %1876 = vmatprep.subr.bf16.mxu1 %v1875_v19 }
 0x1fa   :  { %v513_v53 = vadd.f32 %v511_v52, %v509_v51 }
 0x1fb   :  { %1878 = vmatpush3.bf16.msra.mxu1 %v1875_v19 }
 0x1fc   :  { %v514_v55 = vmul.f32 0.001953125, %v513_v53  ;;  %1880 = vmatprep.subr.bf16.mxu1 %v1879_v22 }
 0x1fe   :  { %v516_v56 = vsub.f32 %v514_v55, %v515_v54 }
 0x1ff   :  { %1882 = vmatpush3.bf16.msra.mxu1 %v1879_v22 }
 0x200   :  { %v518_v57 = vadd.f32 1e-05, %v516_v56  ;;  %1884 = vmatprep.subr.bf16.mxu1 %v1883_v26 }
 0x202   :  { %1986 = vrsqrt.f32 %v518_v57 }
 0x203   :  { %1886 = vmatpush3.bf16.msra.mxu1 %v1883_v26 }
 0x204   :  { %1888 = vmatprep.subr.bf16.mxu1 %v1887_v30 }
 0x207   :  { %1890 = vmatpush3.bf16.msra.mxu1 %v1887_v30 }
 0x208   :  { %1892 = vmatprep.subr.bf16.mxu1 %v2417_v35 }
 0x20c   :  { %v1987_v62 = vpop.eup %1986 }
 0x20d   :  { %v2295_v63 = vmul.f32 %v1987_v62, %v517_v60 }
 0x20f   :  { %v522_v1 = vmul.f32 %v2295_v63, %v452_v50  ;;  %v2303_v2 = vrot.slane %v2295_v63, %v2293_v61 }
 0x211   :  { %v2305_v3 = vsub.f32 %v521_v0, %v522_v1  ;;  %532 = vrot.lane.b32.xlu1 %v2303_v2, %s2007_s25  ;;  %529 = vrot.lane.b32.xlu0 %v2303_v2, %s2008_s26 }
 0x213   :  { %v2313_v4 = vrot.slane %v2305_v3, %v2293_v61 }
 0x215   :  { %535 = vrot.lane.b32.xlu0 %v2303_v2, %s2006_s24  ;;  %617 = vrot.lane.b32.xlu1 %v2313_v4, %s2008_s26 }
 0x219   :  { %538 = vrot.lane.b32.xlu0 %v2303_v2, %s2005_s23  ;;  %620 = vrot.lane.b32.xlu1 %v2313_v4, %s2007_s25 }
 0x21d   :  { %541 = vrot.lane.b32.xlu0 %v2303_v2, %s2004_s22  ;;  %623 = vrot.lane.b32.xlu1 %v2313_v4, %s2006_s24 }
 0x221   :  { %544 = vrot.lane.b32.xlu0 %v2303_v2, %s2003_s21  ;;  %626 = vrot.lane.b32.xlu1 %v2313_v4, %s2005_s23 }
 0x225   :  { %547 = vrot.lane.b32.xlu0 %v2303_v2, %s2002_s20  ;;  %629 = vrot.lane.b32.xlu1 %v2313_v4, %s2004_s22 }
 0x229   :  { %550 = vrot.lane.b32.xlu0 %v2303_v2, %s2001_s19  ;;  %632 = vrot.lane.b32.xlu1 %v2313_v4, %s2003_s21 }
 0x22d   :  { %553 = vrot.lane.b32.xlu0 %v2303_v2, %s2000_s18  ;;  %635 = vrot.lane.b32.xlu1 %v2313_v4, %s2002_s20 }
 0x231   :  { %556 = vrot.lane.b32.xlu0 %v2303_v2, %s1999_s17  ;;  %638 = vrot.lane.b32.xlu1 %v2313_v4, %s2001_s19 }
 0x235   :  { %559 = vrot.lane.b32.xlu0 %v2303_v2, %s1998_s16  ;;  %641 = vrot.lane.b32.xlu1 %v2313_v4, %s2000_s18 }
 0x239   :  { %562 = vrot.lane.b32.xlu0 %v2303_v2, %s1996_s14  ;;  %644 = vrot.lane.b32.xlu1 %v2313_v4, %s1999_s17 }
 0x23d   :  { %565 = vrot.lane.b32.xlu0 %v2303_v2, %s1994_s1  ;;  %647 = vrot.lane.b32.xlu1 %v2313_v4, %s1998_s16 }
 0x241   :  { %568 = vrot.lane.b32.xlu0 %v2303_v2, %s1997_s15  ;;  %650 = vrot.lane.b32.xlu1 %v2313_v4, %s1996_s14 }
 0x245   :  { %571 = vrot.lane.b32.xlu0 %v2303_v2, %s1995_s13  ;;  %653 = vrot.lane.b32.xlu1 %v2313_v4, %s1994_s1 }
 0x249   :  { %656 = vrot.lane.b32.xlu0 %v2313_v4, %s1997_s15  ;;  %659 = vrot.lane.b32.xlu1 %v2313_v4, %s1995_s13 }
 0x283   :  { %v533_v36 = vpop.permute.xlu1 %532  ;;  %v530_v37 = vpop.permute.xlu0 %529 }
 0x284   :  { %v575_v57 = vsel %vm574_vm3, %v2295_v63, %v530_v37 }
 0x285   :  { %v577_v58 = vsel %vm576_vm4, %v575_v57, %v533_v36 }
 0x287   :  { %v536_v39 = vpop.permute.xlu0 %535  ;;  %v618_v40 = vpop.permute.xlu1 %617 }
 0x288   :  { %v579_v62 = vsel %vm2749_vm5, %v577_v58, %v536_v39  ;;  %v662_v63 = vsel %vm574_vm3, %v2305_v3, %v618_v40 }
 0x28b   :  { %v539_v41 = vpop.permute.xlu0 %538  ;;  %v621_v42 = vpop.permute.xlu1 %620 }
 0x28c   :  { %v581_v0 = vsel %vm2750_vm6, %v579_v62, %v539_v41  ;;  %v663_v6 = vsel %vm576_vm4, %v662_v63, %v621_v42 }
 0x28f   :  { %v542_v43 = vpop.permute.xlu0 %541  ;;  %v624_v44 = vpop.permute.xlu1 %623 }
 0x290   :  { %v583_v1 = vsel %vm582_vm7, %v581_v0, %v542_v43  ;;  %v664_v8 = vsel %vm2749_vm5, %v663_v6, %v624_v44  ;;  %vm600_vm5 = vcmask 916480   ;;  %v724_v6 = vld [vmem:[%s2745_s2 + $0x38] sm:$0xff] }
 0x293   :  { %v545_v45 = vpop.permute.xlu0 %544  ;;  %v627_v46 = vpop.permute.xlu1 %626 }
 0x294   :  { %v585_v2 = vsel %vm584_vm8, %v583_v1, %v545_v45  ;;  %v665_v10 = vsel %vm2750_vm6, %v664_v8, %v627_v46  ;;  %vm2751_vm6 = vcmask 982016   ;;  %v725_v8 = vld [vmem:[%s2745_s2 + $0x40] sm:$0xff] }
 0x297   :  { %v548_v47 = vpop.permute.xlu0 %547  ;;  %v630_v48 = vpop.permute.xlu1 %629 }
 0x298   :  { %v587_v7 = vsel %vm586_vm9, %v585_v2, %v548_v47  ;;  %v666_v3 = vsel %vm582_vm7, %v665_v10, %v630_v48 }
 0x29b   :  { %v551_v49 = vpop.permute.xlu0 %550  ;;  %v633_v50 = vpop.permute.xlu1 %632 }
 0x29c   :  { %v589_v9 = vsel %vm588_vm10, %v587_v7, %v551_v49  ;;  %v667_v15 = vsel %vm584_vm8, %v666_v3, %v633_v50  ;;  %v719_v49 = vld [vmem:[%s2745_s2 + $0x10] sm:$0xff]  ;;  %v720_v50 = vld [vmem:[%s2745_s2 + $0x18] sm:$0xff] }
 0x29d   :  { %v728_v3 = vld [vmem:[%s2745_s2 + $0x58] sm:$0xff] }
 0x29f   :  { %v554_v51 = vpop.permute.xlu0 %553  ;;  %v636_v52 = vpop.permute.xlu1 %635 }
 0x2a0   :  { %v591_v11 = vsel %vm590_vm11, %v589_v9, %v554_v51  ;;  %v668_v17 = vsel %vm586_vm9, %v667_v15, %v636_v52  ;;  %v726_v9 = vld [vmem:[%s2745_s2 + $0x48] sm:$0xff] }
 0x2a1   :  { %v1907_v10 = vpack.c.bf16 %v726_v9, %v725_v8 }
 0x2a3   :  { %v557_v53 = vpop.permute.xlu0 %556  ;;  %v639_v54 = vpop.permute.xlu1 %638 }
 0x2a4   :  { %v593_v12 = vsel %vm592_vm12, %v591_v11, %v557_v53  ;;  %v669_v19 = vsel %vm588_vm10, %v668_v17, %v639_v54  ;;  %v727_v11 = vld [vmem:[%s2745_s2 + $0x50] sm:$0xff]  ;;  %v732_v17 = vld [vmem:[%s2745_s2 + $0x78] sm:$0xff] }
 0x2a7   :  { %v560_v55 = vpop.permute.xlu0 %559  ;;  %v642_v56 = vpop.permute.xlu1 %641 }
 0x2a8   :  { %v595_v16 = vsel %vm594_vm13, %v593_v12, %v560_v55  ;;  %v670_v21 = vsel %vm590_vm11, %v669_v19, %v642_v56  ;;  %v721_v55 = vld [vmem:[%s2745_s2 + $0x20] sm:$0xff]  ;;  %v722_v56 = vld [vmem:[%s2745_s2 + $0x28] sm:$0xff]  ;;  %v1911_v12 = vpack.c.bf16 %v728_v3, %v727_v11 }
 0x2a9   :  { %v1899_v2 = vpack.c.bf16 %v722_v56, %v721_v55  ;;  %v1397_v19 = vld [vmem:[%s2745_s2 + $0x100] sm:$0xff] }
 0x2ab   :  { %v563_v59 = vpop.permute.xlu0 %562  ;;  %v645_v60 = vpop.permute.xlu1 %644 }
 0x2ac   :  { %v597_v18 = vsel %vm596_vm14, %v595_v16, %v563_v59  ;;  %v671_v26 = vsel %vm592_vm12, %v670_v21, %v645_v60  ;;  %v731_v16 = vld [vmem:[%s2745_s2 + $0x70] sm:$0xff] }
 0x2af   :  { %v566_v4 = vpop.permute.xlu0 %565  ;;  %v648_v5 = vpop.permute.xlu1 %647 }
 0x2b0   :  { %v599_v20 = vsel %vm598_vm15, %v597_v18, %v566_v4  ;;  %v672_v29 = vsel %vm594_vm13, %v671_v26, %v648_v5  ;;  %v1919_v18 = vpack.c.bf16 %v732_v17, %v731_v16  ;;  %v1401_v26 = vld [vmem:[%s2745_s2 + $0x120] sm:$0xff] }
 0x2b3   :  { %v569_v13 = vpop.permute.xlu0 %568  ;;  %v651_v14 = vpop.permute.xlu1 %650 }
 0x2b4   :  { %v601_v22 = vsel %vm600_vm5, %v599_v20, %v569_v13  ;;  %v673_v33 = vsel %vm596_vm14, %v672_v29, %v651_v14  ;;  %v729_v13 = vld [vmem:[%s2745_s2 + $0x60] sm:$0xff]  ;;  %v730_v14 = vld [vmem:[%s2745_s2 + $0x68] sm:$0xff] }
 0x2b5   :  { %v1915_v15 = vpack.c.bf16 %v730_v14, %v729_v13  ;;  %v1398_v20 = vld [vmem:[%s2745_s2 + $0x108] sm:$0xff] }
 0x2b6   :  { %v1923_v21 = vpack.c.bf16 %v1398_v20, %v1397_v19 }
 0x2b7   :  { %v572_v23 = vpop.permute.xlu0 %571  ;;  %v654_v24 = vpop.permute.xlu1 %653 }
 0x2b8   :  { %v603_v28 = vsel %vm2751_vm6, %v601_v22, %v572_v23  ;;  %v674_v34 = vsel %vm598_vm15, %v673_v33, %v654_v24  ;;  %v1399_v22 = vld [vmem:[%s2745_s2 + $0x110] sm:$0xff]  ;;  %v1400_v23 = vld [vmem:[%s2745_s2 + $0x118] sm:$0xff] }
 0x2b9   :  { %v607_v30 = vrot.slane %v603_v28, %v2293_v61  ;;  %v1927_v24 = vpack.c.bf16 %v1400_v23, %v1399_v22  ;;  %v1402_v28 = vld [vmem:[%s2745_s2 + $0x128] sm:$0xff]  ;;  %v1404_v33 = vld [vmem:[%s2745_s2 + $0x138] sm:$0xff] }
 0x2ba   :  { %v1931_v29 = vpack.c.bf16 %v1402_v28, %v1401_v26 }
 0x2bb   :  { %v657_v36 = vpop.permute.xlu0 %656  ;;  %v660_v37 = vpop.permute.xlu1 %659  ;;  %v608_v41 = vmul.f32 %v607_v30, %v2244_v27  ;;  %v609_v43 = vmul.f32 %v2240_v25, %v607_v30  ;;  %v610_v44 = vmul.f32 %v607_v30, %v2252_v32  ;;  %v611_v45 = vmul.f32 %v2250_v31, %v607_v30  ;;  %v1403_v30 = vld [vmem:[%s2745_s2 + $0x130] sm:$0xff] }
 0x2bc   :  { %v675_v39 = vsel %vm600_vm5, %v674_v34, %v657_v36  ;;  %v1895_v31 = vpack.c.bf16 %v720_v50, %v719_v49  ;;  %v1935_v34 = vpack.c.bf16 %v1404_v33, %v1403_v30  ;;  %v1406_v36 = vld [vmem:[%s2745_s2 + $0x148] sm:$0xff] }
 0x2bd   :  { %v676_v40 = vsel %vm2751_vm6, %v675_v39, %v660_v37  ;;  %v1939_v37 = vpack.c.bf16 %v1406_v36, %v1405_v38  ;;  %v1407_v39 = vld [vmem:[%s2745_s2 + $0x150] sm:$0xff] }
 0x2be   :  { %v680_v42 = vrot.slane %v676_v40, %v2293_v61  ;;  %v1408_v40 = vld [vmem:[%s2745_s2 + $0x158] sm:$0xff] }
 0x2c0   :  { %v681_v46 = vadd.f32 %v680_v42, %v608_v41  ;;  %v682_v47 = vadd.f32 %v680_v42, %v609_v43  ;;  %v683_v48 = vadd.f32 %v680_v42, %v610_v44  ;;  %v684_v27 = vadd.f32 %v680_v42, %v611_v45  ;;  %v1409_v42 = vld [vmem:[%s2745_s2 + $0x160] sm:$0xff]  ;;  %v1410_v43 = vld [vmem:[%s2745_s2 + $0x168] sm:$0xff]  ;;  %v1411_v45 = vld [vmem:[%s2745_s2 + $0x170] sm:$0xff] }
 0x2c1   :  { %v1943_v41 = vpack.c.bf16 %v1408_v40, %v1407_v39  ;;  %v1947_v44 = vpack.c.bf16 %v1410_v43, %v1409_v42 }
 0x2c2   :  { %v685_v51 = vmax.f32 %v681_v46, 0.0  ;;  %v2472_v52 = vmax.f32 %v682_v47, 0.0  ;;  %v2474_v25 = vmax.f32 %v683_v48, 0.0  ;;  %v2476_v32 = vmax.f32 %v684_v27, 0.0  ;;  %v1412_v46 = vld [vmem:[%s2745_s2 + $0x178] sm:$0xff] }
 0x2c3   :  { %v1951_v47 = vpack.c.bf16 %v1412_v46, %v1411_v45 }
 0x2c4   :  { %1681 = vmatprep.mubr.f32.mxu1 %v685_v51  ;;  %v694_v53 = vrot.slane %v2472_v52, 7  ;;  %v693_v54 = vrot.slane %v685_v51, 7  ;;  %v696_v57 = vrot.slane %v2474_v25, 7  ;;  %v697_v58 = vrot.slane %v2476_v32, 7 }
 0x2c5   :  { %1682 = vmatmul.mubr.f32.vlgmr.msra.gmra.mrb[0].mxu1 %v2472_v52  ;;  %v705_v59 = vrot.slane %v685_v51, 1  ;;  %v706_v60 = vrot.slane %v2472_v52, 1  ;;  %v708_v62 = vrot.slane %v2474_v25, 1  ;;  %v709_v0 = vrot.slane %v2476_v32, 1 }
 0x2c6   :  { %1894 = vmatpush3.bf16.msra.mxu1 %v2417_v35  ;;  %1684 = vmatprep.mubr.f32.mxu1 %v2474_v25  ;;  %v695_v1 = vsel %vm34_vm0, %v693_v54, %v694_v53  ;;  %v698_v63 = vsel %vm34_vm0, %v696_v57, %v697_v58  ;;  %v723_v35 = vld [vmem:[%s2745_s2 + $0x30] sm:$0xff]  ;;  %vm2754_vm0 = vcmask 195584  }
 0x2c7   :  { %1896 = vmatprep.subr.bf16.mxu1 %v1895_v31  ;;  %v707_v4 = vsel %vm47_vm2, %v705_v59, %v706_v60  ;;  %v2501_v5 = vsel %vm47_vm2, %v708_v62, %v709_v0  ;;  %v1903_v7 = vpack.c.bf16 %v724_v6, %v723_v35 }
 0x2c9   :  { %1685 = vmatmul.mubr.f32.gmra.mrb[2].mxu1 %v2476_v32 }
 0x2ca   :  { %1898 = vmatpush3.bf16.msra.mxu1 %v1895_v31  ;;  %1719 = vmatprep.mubr.msk.f32.mxu1 %vm2140_vm1, %v693_v54 }
 0x2cb   :  { %1900 = vmatprep.subr.bf16.mxu1 %v1899_v2 }
 0x2ce   :  { %1902 = vmatpush3.bf16.msra.mxu1 %v1899_v2 }
 0x2cf   :  { %1904 = vmatprep.subr.bf16.mxu1 %v1903_v7 }
 0x2d2   :  { %1906 = vmatpush3.bf16.msra.mxu1 %v1903_v7 }
 0x2d3   :  { %1908 = vmatprep.subr.bf16.mxu1 %v1907_v10 }
 0x2d6   :  { %1910 = vmatpush3.bf16.msra.mxu1 %v1907_v10 }
 0x2d7   :  { %1912 = vmatprep.subr.bf16.mxu1 %v1911_v12 }
 0x2da   :  { %1914 = vmatpush3.bf16.msra.mxu1 %v1911_v12 }
 0x2db   :  { %1916 = vmatprep.subr.bf16.mxu1 %v1915_v15 }
 0x2de   :  { %1918 = vmatpush3.bf16.msra.mxu1 %v1915_v15 }
 0x2df   :  { %1920 = vmatprep.subr.bf16.mxu1 %v1919_v18 }
 0x2e2   :  { %1922 = vmatpush3.bf16.msra.mxu1 %v1919_v18 }
 0x2e3   :  { %1924 = vmatprep.subr.bf16.mxu1 %v1923_v21 }
 0x2e5   :  { %1720 = vmatmul.mubr.f32.vlgmr.msra.gmra.mrb[0].mxu1 %v695_v1 }
 0x2e6   :  { %1722 = vmatprep.mubr.msk.f32.mxu1 %vm2140_vm1, %v696_v57  ;;  %1926 = vmatpush3.bf16.msra.mxu1 %v1923_v21  ;;  %vm2755_vm1 = vcmask 261120  }
 0x2e7   :  { %1928 = vmatprep.subr.bf16.mxu1 %v1927_v24  ;;  %vm2757_vm6 = vmmov %vm2755_vm1 }
 0x2e9   :  { %1723 = vmatmul.mubr.f32.gmra.mrb[2].mxu1 %v698_v63 }
 0x2ea   :  { %1930 = vmatpush3.bf16.msra.mxu1 %v1927_v24  ;;  %1757 = vmatprep.mubr.f32.mxu1 %v707_v4 }
 0x2eb   :  { %1932 = vmatprep.subr.bf16.mxu1 %v1931_v29 }
 0x2ee   :  { %1934 = vmatpush3.bf16.msra.mxu1 %v1931_v29 }
 0x2ef   :  { %1936 = vmatprep.subr.bf16.mxu1 %v1935_v34 }
 0x2f2   :  { %1938 = vmatpush3.bf16.msra.mxu1 %v1935_v34 }
 0x2f3   :  { %1940 = vmatprep.subr.bf16.mxu1 %v1939_v37 }
 0x2f6   :  { %1942 = vmatpush3.bf16.msra.mxu1 %v1939_v37 }
 0x2f7   :  { %1944 = vmatprep.subr.bf16.mxu1 %v1943_v41 }
 0x2fa   :  { %1946 = vmatpush3.bf16.msra.mxu1 %v1943_v41 }
 0x2fb   :  { %1948 = vmatprep.subr.bf16.mxu1 %v1947_v44 }
 0x2fe   :  { %1950 = vmatpush3.bf16.msra.mxu1 %v1947_v44 }
 0x2ff   :  { %1952 = vmatprep.subr.bf16.mxu1 %v1951_v47 }
 0x302   :  { %1954 = vmatpush3.bf16.msra.mxu1 %v1951_v47 }
 0x305   :  { %1758 = vmatmul.mubr.msk.f32.vlgmr.msra.gmra.mrb[0].mxu1 %vm47_vm2, %v706_v60 }
 0x306   :  { %1760 = vmatprep.mubr.f32.mxu1 %v2501_v5 }
 0x309   :  { %1761 = vmatmul.mubr.msk.f32.gmra.mrb[2].mxu1 %vm47_vm2, %v709_v0  ;;  %vm2756_vm2 = vmmov %vm2754_vm0 }
 0x3d8   :  { %v2593_v48 = vpop.f32.mrb[0].mxu1 }
 0x3d9   :  { %v1036_v49 = vmul.f32 %v2593_v48, %v2593_v48  ;;  %v2597_v50 = vpop.f32.mrb[1].mxu1 }
 0x3da   :  { %v1026_v27 = vadd.f32 %v2593_v48, %v2597_v50  ;;  %v1035_v51 = vmul.f32 %v2597_v50, %v2597_v50 }
 0x3dc   :  { %v1039_v52 = vadd.f32 %v1036_v49, %v1035_v51  ;;  %v2603_v25 = vpop.f32.mrb[2].mxu1 }
 0x3dd   :  { %v2605_v31 = vpop.f32.mrb[3].mxu1  ;;  %v1038_v54 = vmul.f32 %v2603_v25, %v2603_v25 }
 0x3de   :  { %v1027_v32 = vadd.f32 %v1026_v27, %v2605_v31  ;;  %v1037_v53 = vmul.f32 %v2605_v31, %v2605_v31 }
 0x3e0   :  { %v1028_v55 = vadd.f32 %v2603_v25, %v1027_v32  ;;  %v1040_v56 = vadd.f32 %v1039_v52, %v1037_v53 }
 0x3e2   :  { %v1029_v57 = vrot.slane %v1028_v55, 4  ;;  %v1041_v58 = vadd.f32 %v1040_v56, %v1038_v54 }
 0x3e4   :  { %v1030_v59 = vadd.f32 %v1029_v57, %v1028_v55  ;;  %v1042_v60 = vrot.slane %v1041_v58, 4 }
 0x3e6   :  { %v1031_v62 = vrot.slane %v1030_v59, 2  ;;  %v1043_v0 = vadd.f32 %v1042_v60, %v1041_v58 }
 0x3e8   :  { %v1032_v1 = vadd.f32 %v1031_v62, %v1030_v59  ;;  %v1044_v63 = vrot.slane %v1043_v0, 2 }
 0x3ea   :  { %v1033_v2 = vrot.slane %v1032_v1, 1  ;;  %v1045_v4 = vadd.f32 %v1044_v63, %v1043_v0 }
 0x3ec   :  { %v1034_v5 = vadd.f32 %v1033_v2, %v1032_v1  ;;  %v1046_v35 = vrot.slane %v1045_v4, 1 }
 0x3ee   :  { %1053 = vrot.lane.b32.xlu1 %v1034_v5, %s1997_s15  ;;  %1049 = vrot.lane.b32.xlu0 %v1034_v5, %s1995_s13  ;;  %v1047_v6 = vadd.f32 %v1046_v35, %v1045_v4 }
 0x3f2   :  { %1057 = vrot.lane.b32.xlu1 %v1034_v5, %s1994_s1  ;;  %1111 = vrot.lane.b32.xlu0 %v1047_v6, %s1995_s13 }
 0x3f6   :  { %1061 = vrot.lane.b32.xlu1 %v1034_v5, %s1996_s14  ;;  %1115 = vrot.lane.b32.xlu0 %v1047_v6, %s1997_s15 }
 0x3fa   :  { %1065 = vrot.lane.b32.xlu1 %v1034_v5, %s1998_s16  ;;  %1119 = vrot.lane.b32.xlu0 %v1047_v6, %s1994_s1 }
 0x3fe   :  { %1069 = vrot.lane.b32.xlu1 %v1034_v5, %s1999_s17  ;;  %1123 = vrot.lane.b32.xlu0 %v1047_v6, %s1996_s14 }
 0x402   :  { %1073 = vrot.lane.b32.xlu1 %v1034_v5, %s2000_s18  ;;  %1127 = vrot.lane.b32.xlu0 %v1047_v6, %s1998_s16 }
 0x406   :  { %1077 = vrot.lane.b32.xlu1 %v1034_v5, %s2001_s19  ;;  %1131 = vrot.lane.b32.xlu0 %v1047_v6, %s1999_s17 }
 0x40a   :  { %1081 = vrot.lane.b32.xlu1 %v1034_v5, %s2002_s20  ;;  %1135 = vrot.lane.b32.xlu0 %v1047_v6, %s2000_s18 }
 0x40e   :  { %1085 = vrot.lane.b32.xlu1 %v1034_v5, %s2003_s21  ;;  %1139 = vrot.lane.b32.xlu0 %v1047_v6, %s2001_s19 }
 0x412   :  { %1089 = vrot.lane.b32.xlu1 %v1034_v5, %s2004_s22  ;;  %1143 = vrot.lane.b32.xlu0 %v1047_v6, %s2002_s20 }
 0x416   :  { %1093 = vrot.lane.b32.xlu1 %v1034_v5, %s2005_s23  ;;  %1147 = vrot.lane.b32.xlu0 %v1047_v6, %s2003_s21 }
 0x41a   :  { %1097 = vrot.lane.b32.xlu1 %v1034_v5, %s2006_s24  ;;  %1151 = vrot.lane.b32.xlu0 %v1047_v6, %s2004_s22 }
 0x41e   :  { %1101 = vrot.lane.b32.xlu1 %v1034_v5, %s2007_s25  ;;  %1155 = vrot.lane.b32.xlu0 %v1047_v6, %s2005_s23 }
 0x422   :  { %1105 = vrot.lane.b32.xlu1 %v1034_v5, %s2008_s26  ;;  %1159 = vrot.lane.b32.xlu0 %v1047_v6, %s2006_s24 }
 0x426   :  { %1167 = vrot.lane.b32.xlu1 %v1047_v6, %s2008_s26  ;;  %1163 = vrot.lane.b32.xlu0 %v1047_v6, %s2007_s25 }
 0x460   :  { %v1054_v7 = vpop.permute.xlu1 %1053  ;;  %v1050_v8 = vpop.permute.xlu0 %1049 }
 0x461   :  { %v1052_v18 = vadd.f32 %v1050_v8, %v1034_v5 }
 0x463   :  { %v1056_v21 = vadd.f32 %v1054_v7, %v1052_v18 }
 0x464   :  { %v1058_v9 = vpop.permute.xlu1 %1057  ;;  %v1112_v10 = vpop.permute.xlu0 %1111 }
 0x465   :  { %v1060_v24 = vadd.f32 %v1058_v9, %v1056_v21  ;;  %v1114_v26 = vadd.f32 %v1112_v10, %v1047_v6 }
 0x468   :  { %v1062_v11 = vpop.permute.xlu1 %1061  ;;  %v1116_v3 = vpop.permute.xlu0 %1115 }
 0x469   :  { %v1064_v28 = vadd.f32 %v1062_v11, %v1060_v24  ;;  %v1118_v33 = vadd.f32 %v1116_v3, %v1114_v26 }
 0x46c   :  { %v1066_v12 = vpop.permute.xlu1 %1065  ;;  %v1120_v13 = vpop.permute.xlu0 %1119 }
 0x46d   :  { %v1068_v34 = vadd.f32 %v1066_v12, %v1064_v28  ;;  %v1122_v38 = vadd.f32 %v1120_v13, %v1118_v33  ;;  %v1174_v12 = vld [vmem:[%s2746_s5] sm:$0x1] }
 0x470   :  { %v1070_v14 = vpop.permute.xlu1 %1069  ;;  %v1124_v15 = vpop.permute.xlu0 %1123 }
 0x471   :  { %v1072_v36 = vadd.f32 %v1070_v14, %v1068_v34  ;;  %v1126_v40 = vadd.f32 %v1124_v15, %v1122_v38  ;;  %v1178_v15 = vld [vmem:[%s2747_s6] sm:$0x1] }
 0x474   :  { %v1074_v16 = vpop.permute.xlu1 %1073  ;;  %v1128_v17 = vpop.permute.xlu0 %1127 }
 0x475   :  { %v1076_v41 = vadd.f32 %v1074_v16, %v1072_v36  ;;  %v1130_v42 = vadd.f32 %v1128_v17, %v1126_v40 }
 0x478   :  { %v1078_v19 = vpop.permute.xlu1 %1077  ;;  %v1132_v20 = vpop.permute.xlu0 %1131 }
 0x479   :  { %v1080_v43 = vadd.f32 %v1078_v19, %v1076_v41  ;;  %v1134_v46 = vadd.f32 %v1132_v20, %v1130_v42 }
 0x47c   :  { %v1082_v22 = vpop.permute.xlu1 %1081  ;;  %v1136_v23 = vpop.permute.xlu0 %1135 }
 0x47d   :  { %v1084_v47 = vadd.f32 %v1082_v22, %v1080_v43  ;;  %v1138_v49 = vadd.f32 %v1136_v23, %v1134_v46 }
 0x480   :  { %v1086_v29 = vpop.permute.xlu1 %1085  ;;  %v1140_v30 = vpop.permute.xlu0 %1139 }
 0x481   :  { %v1088_v27 = vadd.f32 %v1086_v29, %v1084_v47  ;;  %v1142_v32 = vadd.f32 %v1140_v30, %v1138_v49 }
 0x484   :  { %v1090_v37 = vpop.permute.xlu1 %1089  ;;  %v1144_v39 = vpop.permute.xlu0 %1143 }
 0x485   :  { %v1092_v53 = vadd.f32 %v1090_v37, %v1088_v27  ;;  %v1146_v54 = vadd.f32 %v1144_v39, %v1142_v32 }
 0x488   :  { %v1094_v44 = vpop.permute.xlu1 %1093  ;;  %v1148_v45 = vpop.permute.xlu0 %1147 }
 0x489   :  { %v1096_v55 = vadd.f32 %v1094_v44, %v1092_v53  ;;  %v1150_v58 = vadd.f32 %v1148_v45, %v1146_v54 }
 0x48c   :  { %v1098_v51 = vpop.permute.xlu1 %1097  ;;  %v1152_v52 = vpop.permute.xlu0 %1151 }
 0x48d   :  { %v1100_v59 = vadd.f32 %v1098_v51, %v1096_v55  ;;  %v1154_v60 = vadd.f32 %v1152_v52, %v1150_v58 }
 0x490   :  { %v1102_v56 = vpop.permute.xlu1 %1101  ;;  %v1156_v57 = vpop.permute.xlu0 %1155 }
 0x491   :  { %v1104_v62 = vadd.f32 %v1102_v56, %v1100_v59  ;;  %v1158_v63 = vadd.f32 %v1156_v57, %v1154_v60 }
 0x494   :  { %v1106_v0 = vpop.permute.xlu1 %1105  ;;  %v1160_v1 = vpop.permute.xlu0 %1159 }
 0x495   :  { %v1108_v2 = vadd.f32 %v1106_v0, %v1104_v62  ;;  %v1162_v4 = vadd.f32 %v1160_v1, %v1158_v63 }
 0x497   :  { %v1109_v35 = vmul.f32 0.001953125, %v1108_v2 }
 0x498   :  { %v1164_v5 = vpop.permute.xlu0 %1163  ;;  %v1168_v7 = vpop.permute.xlu1 %1167 }
 0x499   :  { %v1166_v6 = vadd.f32 %v1164_v5, %v1162_v4  ;;  %v1172_v9 = vmul.f32 %v1109_v35, %v1109_v35 }
 0x49b   :  { %v1170_v8 = vadd.f32 %v1168_v7, %v1166_v6 }
 0x49d   :  { %v1171_v10 = vmul.f32 0.001953125, %v1170_v8 }
 0x49f   :  { %v1173_v11 = vsub.f32 %v1171_v10, %v1172_v9 }
 0x4a1   :  { %v1175_v3 = vadd.f32 1e-05, %v1173_v11 }
 0x4a3   :  { %1988 = vrsqrt.f32 %v1175_v3 }
 0x4ad   :  { %v1989_v13 = vpop.eup %1988 }
 0x4ae   :  { %v1177_v14 = vmul.f32 %v1989_v13, %v1174_v12 }
 0x4b0   :  { %v1179_v16 = vmul.f32 %v1177_v14, %v1109_v35  ;;  %v1185_v17 = vrot.slane %v1177_v14, %v2293_v61 }
 0x4b2   :  { %v1180_v18 = vsub.f32 %v1178_v15, %v1179_v16  ;;  %1189 = vrot.lane.b32.xlu1 %v1185_v17, %s2007_s25  ;;  %1186 = vrot.lane.b32.xlu0 %v1185_v17, %s2008_s26 }
 0x4b4   :  { %v1258_v19 = vrot.slane %v1180_v18, %v2293_v61 }
 0x4b6   :  { %1192 = vrot.lane.b32.xlu0 %v1185_v17, %s2006_s24  ;;  %1259 = vrot.lane.b32.xlu1 %v1258_v19, %s2008_s26 }
 0x4ba   :  { %1195 = vrot.lane.b32.xlu0 %v1185_v17, %s2005_s23  ;;  %1262 = vrot.lane.b32.xlu1 %v1258_v19, %s2007_s25 }
 0x4be   :  { %1198 = vrot.lane.b32.xlu0 %v1185_v17, %s2004_s22  ;;  %1265 = vrot.lane.b32.xlu1 %v1258_v19, %s2006_s24 }
 0x4c2   :  { %1201 = vrot.lane.b32.xlu0 %v1185_v17, %s2003_s21  ;;  %1268 = vrot.lane.b32.xlu1 %v1258_v19, %s2005_s23 }
 0x4c6   :  { %1204 = vrot.lane.b32.xlu0 %v1185_v17, %s2002_s20  ;;  %1271 = vrot.lane.b32.xlu1 %v1258_v19, %s2004_s22 }
 0x4ca   :  { %1207 = vrot.lane.b32.xlu0 %v1185_v17, %s2001_s19  ;;  %1274 = vrot.lane.b32.xlu1 %v1258_v19, %s2003_s21 }
 0x4ce   :  { %1210 = vrot.lane.b32.xlu0 %v1185_v17, %s2000_s18  ;;  %1277 = vrot.lane.b32.xlu1 %v1258_v19, %s2002_s20 }
 0x4d2   :  { %1213 = vrot.lane.b32.xlu0 %v1185_v17, %s1999_s17  ;;  %1280 = vrot.lane.b32.xlu1 %v1258_v19, %s2001_s19 }
 0x4d6   :  { %1216 = vrot.lane.b32.xlu0 %v1185_v17, %s1998_s16  ;;  %1283 = vrot.lane.b32.xlu1 %v1258_v19, %s2000_s18 }
 0x4da   :  { %1219 = vrot.lane.b32.xlu0 %v1185_v17, %s1996_s14  ;;  %1286 = vrot.lane.b32.xlu1 %v1258_v19, %s1999_s17 }
 0x4de   :  { %1222 = vrot.lane.b32.xlu0 %v1185_v17, %s1994_s1  ;;  %1289 = vrot.lane.b32.xlu1 %v1258_v19, %s1998_s16 }
 0x4e2   :  { %1225 = vrot.lane.b32.xlu0 %v1185_v17, %s1997_s15  ;;  %1292 = vrot.lane.b32.xlu1 %v1258_v19, %s1996_s14 }
 0x4e6   :  { %1228 = vrot.lane.b32.xlu0 %v1185_v17, %s1995_s13  ;;  %1295 = vrot.lane.b32.xlu1 %v1258_v19, %s1994_s1 }
 0x4ea   :  { %1298 = vrot.lane.b32.xlu0 %v1258_v19, %s1997_s15  ;;  %1301 = vrot.lane.b32.xlu1 %v1258_v19, %s1995_s13 }
 0x524   :  { %v1190_v20 = vpop.permute.xlu1 %1189  ;;  %v1187_v21 = vpop.permute.xlu0 %1186 }
 0x525   :  { %v1231_v45 = vsel %vm574_vm3, %v1177_v14, %v1187_v21 }
 0x526   :  { %v1232_v46 = vsel %vm576_vm4, %v1231_v45, %v1190_v20 }
 0x528   :  { %v1193_v22 = vpop.permute.xlu0 %1192  ;;  %v1260_v23 = vpop.permute.xlu1 %1259 }
 0x529   :  { %v1233_v27 = vsel %vm2754_vm0, %v1232_v46, %v1193_v22  ;;  %v1304_v32 = vsel %vm574_vm3, %v1180_v18, %v1260_v23  ;;  %vm2758_vm3 = vcmask 982016  }
 0x52c   :  { %v1196_v24 = vpop.permute.xlu0 %1195  ;;  %v1263_v26 = vpop.permute.xlu1 %1262 }
 0x52d   :  { %v1234_v51 = vsel %vm2755_vm1, %v1233_v27, %v1196_v24  ;;  %v1305_v56 = vsel %vm576_vm4, %v1304_v32, %v1263_v26  ;;  %vm2759_vm4 = vmmov %vm2758_vm3 }
 0x530   :  { %v1199_v28 = vpop.permute.xlu0 %1198  ;;  %v1266_v29 = vpop.permute.xlu1 %1265 }
 0x531   :  { %v1235_v52 = vsel %vm582_vm7, %v1234_v51, %v1199_v28  ;;  %v1306_v58 = vsel %vm2756_vm2, %v1305_v56, %v1266_v29 }
 0x534   :  { %v1202_v30 = vpop.permute.xlu0 %1201  ;;  %v1269_v33 = vpop.permute.xlu1 %1268 }
 0x535   :  { %v1236_v53 = vsel %vm584_vm8, %v1235_v52, %v1202_v30  ;;  %v1307_v60 = vsel %vm2757_vm6, %v1306_v58, %v1269_v33 }
 0x538   :  { %v1205_v34 = vpop.permute.xlu0 %1204  ;;  %v1272_v38 = vpop.permute.xlu1 %1271 }
 0x539   :  { %v1237_v57 = vsel %vm586_vm9, %v1236_v53, %v1205_v34  ;;  %v1308_v0 = vsel %vm582_vm7, %v1307_v60, %v1272_v38  ;;  %v1990_v38 = vld [vmem:[%s2742_s0] sm:$0xff] }
 0x53c   :  { %v1208_v36 = vpop.permute.xlu0 %1207  ;;  %v1275_v37 = vpop.permute.xlu1 %1274 }
 0x53d   :  { %v1238_v59 = vsel %vm588_vm10, %v1237_v57, %v1208_v36  ;;  %v1309_v4 = vsel %vm584_vm8, %v1308_v0, %v1275_v37 }
 0x540   :  { %v1211_v39 = vpop.permute.xlu0 %1210  ;;  %v1278_v40 = vpop.permute.xlu1 %1277 }
 0x541   :  { %v1239_v62 = vsel %vm590_vm11, %v1238_v59, %v1211_v39  ;;  %v1310_v35 = vsel %vm586_vm9, %v1309_v4, %v1278_v40 }
 0x544   :  { %v1214_v41 = vpop.permute.xlu0 %1213  ;;  %v1281_v42 = vpop.permute.xlu1 %1280 }
 0x545   :  { %v1240_v1 = vsel %vm592_vm12, %v1239_v62, %v1214_v41  ;;  %v1311_v7 = vsel %vm588_vm10, %v1310_v35, %v1281_v42 }
 0x548   :  { %v1217_v43 = vpop.permute.xlu0 %1216  ;;  %v1284_v44 = vpop.permute.xlu1 %1283 }
 0x549   :  { %v1241_v5 = vsel %vm594_vm13, %v1240_v1, %v1217_v43  ;;  %v1312_v9 = vsel %vm590_vm11, %v1311_v7, %v1284_v44 }
 0x54c   :  { %v1220_v47 = vpop.permute.xlu0 %1219  ;;  %v1287_v49 = vpop.permute.xlu1 %1286 }
 0x54d   :  { %v1242_v6 = vsel %vm596_vm14, %v1241_v5, %v1220_v47  ;;  %v1313_v12 = vsel %vm592_vm12, %v1312_v9, %v1287_v49 }
 0x550   :  { %v1223_v54 = vpop.permute.xlu0 %1222  ;;  %v1290_v55 = vpop.permute.xlu1 %1289 }
 0x551   :  { %v1243_v8 = vsel %vm598_vm15, %v1242_v6, %v1223_v54  ;;  %v1314_v14 = vsel %vm594_vm13, %v1313_v12, %v1290_v55 }
 0x554   :  { %v1226_v63 = vpop.permute.xlu0 %1225  ;;  %v1293_v2 = vpop.permute.xlu1 %1292 }
 0x555   :  { %v1244_v10 = vsel %vm600_vm5, %v1243_v8, %v1226_v63  ;;  %v1315_v16 = vsel %vm596_vm14, %v1314_v14, %v1293_v2 }
 0x558   :  { %v1229_v11 = vpop.permute.xlu0 %1228  ;;  %v1296_v3 = vpop.permute.xlu1 %1295 }
 0x559   :  { %v1245_v13 = vsel %vm2758_vm3, %v1244_v10, %v1229_v11  ;;  %v1316_v17 = vsel %vm598_vm15, %v1315_v16, %v1296_v3 }
 0x55a   :  { %v1249_v15 = vrot.slane %v1245_v13, %v2293_v61 }
 0x55c   :  { %v1299_v18 = vpop.permute.xlu0 %1298  ;;  %v1302_v19 = vpop.permute.xlu1 %1301  ;;  %v1250_v21 = vmul.f32 %v1249_v15, %v2597_v50  ;;  %v1251_v23 = vmul.f32 %v2593_v48, %v1249_v15  ;;  %v1252_v24 = vmul.f32 %v1249_v15, %v2605_v31  ;;  %v1253_v26 = vmul.f32 %v2603_v25, %v1249_v15  ;;  %v1991_v50 = vld [vmem:[%s2742_s0 + $0x8] sm:$0xff]  ;;  %v1992_v25 = vld [vmem:[%s2742_s0 + $0x10] sm:$0xff] }
 0x55d   :  { %v1317_v20 = vsel %vm600_vm5, %v1316_v17, %v1299_v18 }
 0x55e   :  { %v1318_v22 = vsel %vm2759_vm4, %v1317_v20, %v1302_v19 }
 0x55f   :  { %v1322_v28 = vrot.slane %v1318_v22, %v2293_v61  ;;  %v1993_v61 = vld [vmem:[%s2742_s0 + $0x18] sm:$0xff] }
 0x561   :  { %v1323_v29 = vadd.f32 %v1322_v28, %v1250_v21  ;;  %v1324_v30 = vadd.f32 %v1322_v28, %v1251_v23  ;;  %v1325_v33 = vadd.f32 %v1322_v28, %v1252_v24  ;;  %v1326_v34 = vadd.f32 %v1322_v28, %v1253_v26 }
 0x563   :  { %v1327_v36 = vadd.f32 %v1990_v38, %v1323_v29  ;;  %v1328_v48 = vadd.f32 %v1991_v50, %v1324_v30  ;;  %v1329_v31 = vadd.f32 %v1992_v25, %v1325_v33  ;;  %v1330_v37 = vadd.f32 %v1993_v61, %v1326_v34 }
 0x565   :  { %1331 = vst [vmem:[%s2748_s7] sm:$0xff] %v1327_v36  ;;  %1332 = vst [vmem:[%s2748_s7 + $0x8] sm:$0xff] %v1328_v48 }
 0x566   :  { %1333 = vst [vmem:[%s2748_s7 + $0x10] sm:$0xff] %v1329_v31  ;;  %1334 = vst [vmem:[%s2748_s7 + $0x18] sm:$0xff] %v1330_v37 }

</bundles_post_ra>
